<compile_context>
chip_gen: v7x
topology: tpu7x:2x2x1
jax: 0.10.0
libtpu: 0.0.40
codegen_flags: <defaults>
</compile_context>

<pallas_src>
import functools

import jax
import jax.numpy as jnp
from jax import lax
from jax.experimental import pallas as pl
from jax.experimental.pallas import tpu as pltpu

EPS = 1e-5


def _vmem_limit_bytes():
    # ~48 MiB on v7x (64 MiB VMEM/TC), ~96 MiB on v5e/v6e (128 MiB parts).
    try:
        cap = int(pltpu.get_tpu_info().vmem_capacity_bytes)
    except Exception:
        cap = 64 * 1024 * 1024
    return max(32 * 1024 * 1024, min(3 * cap // 4, 96 * 1024 * 1024))


def _deconv_stats_kernel(x_ref, h_ref, m_ref, w_ref, y_ref, s_ref, *, offs, c_out, fat_k):
    """Parity-decomposed ConvTranspose2d (ReLU pre-applied on host) + fused BN partials.

    x_ref : (tr, C_in)         bf16 row tile of the padded, flattened, ReLU'd input
    h_ref : (1, Hh, C_in)      bf16 halo (the 2*Wp+2 flattened rows after the tile)
    m_ref : (tr, 1)            f32 validity mask (0 on padded rows / columns)
    w_ref : (9*C_in, 4*C_out)  bf16  [fat_k=True]   shift-major packed weights
            (4, 4*C_in, C_out) bf16  [fat_k=False]  per-parity tap-concat weights
    y_ref : (tr, 4*C_out)      bf16 parity-packed (lane-dense) output tile
    s_ref : (1, 2, 4*C_out)    f32 per-tile [sum, sum-of-squares] of the pre-cast values
    """
    tr = x_ref.shape[0]
    xa = jnp.concatenate([x_ref[...], h_ref[0]], axis=0)        # (tr + Hh, C_in) bf16
    m = m_ref[...]                                              # (tr, 1) f32

    if fat_k:
        # one MXU call: (tr, 9*C_in) @ (9*C_in, 4*C_out); unused taps are zero weights
        xc = jnp.concatenate([xa[o:o + tr, :] for o in offs], axis=1)
        y = jnp.dot(xc, w_ref[...], preferred_element_type=jnp.float32) * m
        y_ref[...] = y.astype(y_ref.dtype)
        s1 = jnp.sum(y, axis=0, keepdims=True)
        s2 = jnp.sum(y * y, axis=0, keepdims=True)
    else:
        # four MXU calls, K = 4*C_in, one per output parity; no wasted FLOPs; each
        # result goes straight into its static lane slice (no accumulator concat).
        s1p, s2p = [], []
        for p, poffs in enumerate(offs):
            xc = jnp.concatenate([xa[o:o + tr, :] for o in poffs], axis=1)
            y = jnp.dot(xc, w_ref[p], preferred_element_type=jnp.float32) * m
            y_ref[:, p * c_out:(p + 1) * c_out] = y.astype(y_ref.dtype)
            s1p.append(jnp.sum(y, axis=0, keepdims=True))
            s2p.append(jnp.sum(y * y, axis=0, keepdims=True))
        s1 = jnp.concatenate(s1p, axis=1)
        s2 = jnp.concatenate(s2p, axis=1)

    s_ref[...] = jnp.concatenate([s1, s2], axis=0)[None]        # (1, 2, 4*C_out)


def decoder_block_forward(x_nchw, w, b, gamma, beta, *, row_tile=512, fat_k=None):
    """ReLU -> ConvTranspose2d(k=4, s=2, p=1) -> BatchNorm2d (training-mode batch stats).

    x_nchw: (N, C_in, H, W); w: (C_in, C_out, 4, 4); b, gamma, beta: (C_out,)
    Returns (N, C_out, 2H, 2W) NCHW f32.  `b` is accepted for interface parity but
    unused: the batch-mean subtraction of training-mode BN cancels the conv bias
    exactly (re-add it if this block is ever run with running/eval statistics).
    """
    del b
    N, C_in, H, W = x_nchw.shape
    C_out = w.shape[1]
    Hp, Wp = H + 2, W + 2
    total = N * Hp * Wp
    if fat_k is None:
        # fat single dot for the small-channel outer layers; per-parity for wide layers
        fat_k = C_in <= 128

    # ---- host prep: fused ReLU + NCHW->NHWC + zero-pad + bf16 cast (one XLA pass) ----
    xp = jnp.pad(jnp.transpose(jnp.maximum(x_nchw, 0.0), (0, 2, 3, 1)),
                 ((0, 0), (1, 1), (1, 1), (0, 0))).astype(jnp.bfloat16)
    xf = xp.reshape(total, C_in)

    # ---- tiling: large row tiles; >=2 grid steps so a 2-TC part (v7x) keeps both busy
    tr = max(16, (int(row_tile) // 16) * 16)
    if total < 2 * tr:
        tr = max(16, -(-((total + 1) // 2) // 16) * 16)
    num_tiles = -(-total // tr)
    P = num_tiles * tr
    Hh = 2 * Wp + 2                                    # flattened 2-row spatial halo

    xf = jnp.pad(xf, ((0, P + Hh - total), (0, 0)))    # tail zeros: tile pad + halo
    # tiny per-tile halo side-array (one extra small DMA per step) instead of 16x im2col
    halo_idx = (jnp.arange(num_tiles)[:, None] + 1) * tr + jnp.arange(Hh)[None, :]
    xh = xf[halo_idx]                                  # (num_tiles, Hh, C_in)

    # validity mask: zeroes flattened rows that map to padded input positions so the
    # fused BN statistics only see the 4*N*H*W real output positions
    r = jnp.arange(P)
    q = r % (Hp * Wp)
    mask = ((r < total) & (q % Wp < W) & (q // Wp < H)).astype(jnp.float32).reshape(P, 1)

    # ---- per-(parity, tap) weight packing and flat row offsets of the shifted slices
    KH = ((3, 1), (2, 0))                              # tap indices per parity (flipped)
    OFF = (0, 1)                                       # padded-input offset per parity
    if fat_k:
        offs = tuple(dr * Wp + dc for dr in range(3) for dc in range(3))
        w9 = jnp.zeros((3, 3, C_in, 4, C_out), w.dtype)
        for ph in range(2):
            for pw in range(2):
                for a in range(2):
                    for c in range(2):
                        w9 = w9.at[OFF[ph] + a, OFF[pw] + c, :, ph * 2 + pw, :].set(
                            w[:, :, KH[ph][a], KH[pw][c]])
        weff = w9.reshape(9 * C_in, 4 * C_out).astype(jnp.bfloat16)
        w_spec = pl.BlockSpec((9 * C_in, 4 * C_out), lambda i: (0, 0))
    else:
        offs, wl = [], []
        for ph in range(2):
            for pw in range(2):
                offs.append(tuple((OFF[ph] + a) * Wp + (OFF[pw] + c)
                                  for a in range(2) for c in range(2)))
                wl.append(jnp.concatenate([w[:, :, KH[ph][a], KH[pw][c]]
                                           for a in range(2) for c in range(2)], axis=0))
        offs = tuple(offs)
        weff = jnp.stack(wl).astype(jnp.bfloat16)      # (4, 4*C_in, C_out)
        w_spec = pl.BlockSpec((4, 4 * C_in, C_out), lambda i: (0, 0, 0))

    cparams = pltpu.CompilerParams(
        dimension_semantics=("parallel",),
        vmem_limit_bytes=_vmem_limit_bytes())

    # TODO(synk): for the widest inner layers (C_in~1024, C_out=512) shrink row_tile to
    #             ~256 and/or force single-buffering of the constant-index weight block.
    y, stats = pl.pallas_call(
        functools.partial(_deconv_stats_kernel, offs=offs, c_out=C_out, fat_k=fat_k),
        out_shape=(
            jax.ShapeDtypeStruct((P, 4 * C_out), jnp.bfloat16),      # parity-packed act
            jax.ShapeDtypeStruct((num_tiles, 2, 4 * C_out), jnp.float32),  # BN partials
        ),
        grid_spec=pltpu.PrefetchScalarGridSpec(
            num_scalar_prefetch=0,
            grid=(num_tiles,),
            in_specs=[
                pl.BlockSpec((tr, C_in), lambda i: (i, 0)),           # input row tile
                pl.BlockSpec((1, Hh, C_in), lambda i: (i, 0, 0)),     # halo rows
                pl.BlockSpec((tr, 1), lambda i: (i, 0)),              # validity mask
                w_spec,                                               # resident weights
            ],
            out_specs=[
                pl.BlockSpec((tr, 4 * C_out), lambda i: (i, 0)),
                pl.BlockSpec((1, 2, 4 * C_out), lambda i: (i, 0, 0)),
            ],
        ),
        compiler_params=cparams,
    )(xf, xh, mask, weff)

    # ---- BN finalize (O(C_out)) + normalize fused into the NCHW epilogue transpose ----
    count = float(4 * N * H * W)
    S = jnp.sum(stats, axis=0)                          # (2, 4*C_out), f32
    S1 = S[0].reshape(4, C_out).sum(axis=0)             # fold parity lanes
    S2 = S[1].reshape(4, C_out).sum(axis=0)
    mean = S1 / count
    # NOTE: uncentered variance in f32 is adequate for this block's dynamic range;
    #       switch to a centered second pass if a layer's |mean| >> std.
    var = jnp.maximum(S2 / count - mean * mean, 0.0)
    scale = gamma.astype(jnp.float32) * lax.rsqrt(var + EPS)
    shift = beta.astype(jnp.float32) - mean * scale

    # parity interleave + NHWC->NCHW + BN affine, once, as a single fused XLA transform
    # (when chaining decoder blocks, keep channel-last / parity-packed and skip this)
    out = y[:total].reshape(N, Hp, Wp, 2, 2, C_out)[:, :H, :W].astype(jnp.float32)
    out = out * scale + shift
    out = out.transpose(0, 5, 1, 3, 2, 4).reshape(N, C_out, 2 * H, 2 * W)
    return out


def _reference(x, w, b, gamma, beta, *, bf16_act=False):
    """Pure-JAX reference: ReLU -> ConvTranspose2d(k4,s2,p1) -> train-mode BatchNorm2d."""
    fx = jnp.maximum(x, 0.0)
    wT = jnp.transpose(jnp.flip(w, axis=(2, 3)), (1, 0, 2, 3))           # OIHW
    conv = lax.conv_general_dilated(
        fx, wT, window_strides=(1, 1), padding=((2, 2), (2, 2)),
        lhs_dilation=(2, 2), dimension_numbers=('NCHW', 'OIHW', 'NCHW'),
        precision=lax.Precision.HIGHEST)
    conv = conv + b[None, :, None, None]
    mean = conv.mean(axis=(0, 2, 3), keepdims=True)
    var = ((conv - mean) ** 2).mean(axis=(0, 2, 3), keepdims=True)
    act = conv.astype(jnp.bfloat16).astype(jnp.float32) if bf16_act else conv
    return ((act - mean) * lax.rsqrt(var + EPS)
            * gamma[None, :, None, None] + beta[None, :, None, None])


if __name__ == "__main__":
    key = jax.random.PRNGKey(0)
    N, C_in, C_out, H, W = 2, 4, 8, 16, 16
    k1, k2, k3, k4 = jax.random.split(key, 4)

    x = jax.random.normal(k1, (N, C_in, H, W), jnp.float32)
    # deterministic synthetic params (ConvTranspose2d / BatchNorm2d shapes & init scale)
    w = jax.random.normal(k2, (C_in, C_out, 4, 4), jnp.float32) / jnp.sqrt(C_in * 16.0)
    b = jax.random.normal(k3, (C_out,), jnp.float32) * 0.1
    gamma = 1.0 + 0.02 * jax.random.normal(k4, (C_out,), jnp.float32)
    beta = jnp.zeros((C_out,), jnp.float32)

    fwd = jax.jit(decoder_block_forward, static_argnames=("row_tile", "fat_k"))
    outs = {}
    for mode in (True, False):                       # exercise both MXU packings
        outs[mode] = jax.block_until_ready(fwd(x, w, b, gamma, beta, fat_k=mode))
        assert outs[mode].shape == (N, C_out, 2 * H, 2 * W)

    # Equal-precision mirror: bf16 operands, f32 conv accumulation + f32 BN statistics,
    # bf16-rounded activation into the normalize (b=0 since the bias cancels exactly
    # under batch-stat BN).  Isolates structural errors from intended bf16 rounding.
    xq = x.astype(jnp.bfloat16).astype(jnp.float32)
    wq = w.astype(jnp.bfloat16).astype(jnp.float32)
    ref_q = _reference(xq, wq, jnp.zeros_like(b), gamma, beta, bf16_act=True)
    # Full-f32 PyTorch-semantics reference (bias included; it cancels under train BN).
    ref_f = _reference(x, w, b, gamma, beta, bf16_act=False)

    for mode, out in outs.items():
        err_q = float(jnp.max(jnp.abs(out - ref_q)))
        assert jnp.allclose(out, ref_q, atol=2e-2, rtol=2e-2), (mode, err_q)
        err_f = float(jnp.max(jnp.abs(out - ref_f)))
        assert jnp.allclose(out, ref_f, atol=5e-2, rtol=5e-2), (mode, err_f)

    print("KERNEL_OK")
</pallas_src>

<mosaic_0001>
module attributes {stable_mosaic.version = 11 : i64} {
  func.func @_deconv_stats_kernel(%arg0: i32, %arg1: memref<336x4xbf16, #tpu.memory_space<vmem>>, %arg2: memref<1x38x4xbf16, #tpu.memory_space<vmem>>, %arg3: memref<336x1xf32, #tpu.memory_space<vmem>>, %arg4: memref<36x32xbf16, #tpu.memory_space<vmem>>, %arg5: memref<336x32xbf16, #tpu.memory_space<vmem>>, %arg6: memref<1x2x32xf32, #tpu.memory_space<vmem>>) attributes {dimension_semantics = [#tpu.dimension_semantics<parallel>], iteration_bounds = array<i64: 2>, scalar_prefetch = 0 : i64, scratch_operands = 0 : i64, tpu.core_type = #tpu.core_type<tc>, window_params = [{transform_indices = @transform_0, window_bounds = array<i64: 336, 4>}, {transform_indices = @transform_1, window_bounds = array<i64: 1, 38, 4>}, {transform_indices = @transform_2, window_bounds = array<i64: 336, 1>}, {pipeline_mode = #tpu.pipeline_mode<synchronous>, transform_indices = @transform_3, window_bounds = array<i64: 36, 32>}, {transform_indices = @transform_4, window_bounds = array<i64: 336, 32>}, {transform_indices = @transform_5, window_bounds = array<i64: 1, 2, 32>}]} {
    %c0 = arith.constant 0 : index
    %c0_0 = arith.constant 0 : index
    %0 = vector.load %arg1[%c0, %c0_0] : memref<336x4xbf16, #tpu.memory_space<vmem>>, vector<336x4xbf16>
    %c0_1 = arith.constant 0 : index
    %c0_2 = arith.constant 0 : index
    %c0_3 = arith.constant 0 : index
    %1 = vector.load %arg2[%c0_1, %c0_2, %c0_3] : memref<1x38x4xbf16, #tpu.memory_space<vmem>>, vector<1x38x4xbf16>
    %2 = vector.shape_cast %1 : vector<1x38x4xbf16> to vector<38x4xbf16>
    %3 = tpu.concatenate %0, %2 in 0 : vector<336x4xbf16>, vector<38x4xbf16> -> vector<374x4xbf16>
    %c0_4 = arith.constant 0 : index
    %c0_5 = arith.constant 0 : index
    %4 = vector.load %arg3[%c0_4, %c0_5] : memref<336x1xf32, #tpu.memory_space<vmem>>, vector<336x1xf32>
    %5 = vector.extract_strided_slice %3 {offsets = [0, 0], sizes = [336, 4], strides = [1, 1]} : vector<374x4xbf16> to vector<336x4xbf16>
    %6 = vector.extract_strided_slice %3 {offsets = [1, 0], sizes = [336, 4], strides = [1, 1]} : vector<374x4xbf16> to vector<336x4xbf16>
    %7 = vector.extract_strided_slice %3 {offsets = [2, 0], sizes = [336, 4], strides = [1, 1]} : vector<374x4xbf16> to vector<336x4xbf16>
    %8 = vector.extract_strided_slice %3 {offsets = [18, 0], sizes = [336, 4], strides = [1, 1]} : vector<374x4xbf16> to vector<336x4xbf16>
    %9 = vector.extract_strided_slice %3 {offsets = [19, 0], sizes = [336, 4], strides = [1, 1]} : vector<374x4xbf16> to vector<336x4xbf16>
    %10 = vector.extract_strided_slice %3 {offsets = [20, 0], sizes = [336, 4], strides = [1, 1]} : vector<374x4xbf16> to vector<336x4xbf16>
    %11 = vector.extract_strided_slice %3 {offsets = [36, 0], sizes = [336, 4], strides = [1, 1]} : vector<374x4xbf16> to vector<336x4xbf16>
    %12 = vector.extract_strided_slice %3 {offsets = [37, 0], sizes = [336, 4], strides = [1, 1]} : vector<374x4xbf16> to vector<336x4xbf16>
    %13 = vector.extract_strided_slice %3 {offsets = [38, 0], sizes = [336, 4], strides = [1, 1]} : vector<374x4xbf16> to vector<336x4xbf16>
    %14 = tpu.concatenate %5, %6, %7, %8, %9, %10, %11, %12, %13 in 1 : vector<336x4xbf16>, vector<336x4xbf16>, vector<336x4xbf16>, vector<336x4xbf16>, vector<336x4xbf16>, vector<336x4xbf16>, vector<336x4xbf16>, vector<336x4xbf16>, vector<336x4xbf16> -> vector<336x36xbf16>
    %c0_6 = arith.constant 0 : index
    %c0_7 = arith.constant 0 : index
    %15 = vector.load %arg4[%c0_6, %c0_7] : memref<36x32xbf16, #tpu.memory_space<vmem>>, vector<36x32xbf16>
    %cst = arith.constant dense<0.000000e+00> : vector<336x32xf32>
    %16 = tpu.matmul %14, %15, %cst {dimension_numbers = #tpu.dot_dimension_numbers<[1], [0], [0], [1], [0, 0, 1, 1], [], []>} : vector<336x36xbf16>, vector<36x32xbf16>, vector<336x32xf32> -> vector<336x32xf32>
    %17 = vector.broadcast %4 : vector<336x1xf32> to vector<336x32xf32>
    %18 = arith.mulf %16, %17 : vector<336x32xf32>
    %19 = arith.truncf %18 : vector<336x32xf32> to vector<336x32xbf16>
    %c0_8 = arith.constant 0 : index
    %c0_9 = arith.constant 0 : index
    %20 = vector.load %arg5[%c0_8, %c0_9] : memref<336x32xbf16, #tpu.memory_space<vmem>>, vector<336x32xbf16>
    tpu.vector_store %arg5[%c0_8, %c0_9], %19 {strides = array<i32>} : memref<336x32xbf16, #tpu.memory_space<vmem>>, vector<336x32xbf16>,
    %cst_10 = arith.constant dense<0.000000e+00> : vector<32xf32>
    %21 = vector.multi_reduction <add>, %18, %cst_10 [0] : vector<336x32xf32> to vector<32xf32>
    %22 = vector.shape_cast %21 : vector<32xf32> to vector<1x32xf32>
    %23 = arith.mulf %18, %18 : vector<336x32xf32>
    %cst_11 = arith.constant dense<0.000000e+00> : vector<32xf32>
    %24 = vector.multi_reduction <add>, %23, %cst_11 [0] : vector<336x32xf32> to vector<32xf32>
    %25 = vector.shape_cast %24 : vector<32xf32> to vector<1x32xf32>
    %26 = tpu.concatenate %22, %25 in 0 : vector<1x32xf32>, vector<1x32xf32> -> vector<2x32xf32>
    %27 = vector.shape_cast %26 : vector<2x32xf32> to vector<1x2x32xf32>
    %c0_12 = arith.constant 0 : index
    %c0_13 = arith.constant 0 : index
    %c0_14 = arith.constant 0 : index
    %28 = vector.load %arg6[%c0_12, %c0_13, %c0_14] : memref<1x2x32xf32, #tpu.memory_space<vmem>>, vector<1x2x32xf32>
    tpu.vector_store %arg6[%c0_12, %c0_13, %c0_14], %27 {strides = array<i32>} : memref<1x2x32xf32, #tpu.memory_space<vmem>>, vector<1x2x32xf32>,
    return
  }
  func.func @transform_0(%arg0: i32) -> (i32, i32) {
    %c0_i32 = arith.constant 0 : i32
    %c0_i32_0 = arith.constant 0 : i32
    return %arg0, %c0_i32 : i32, i32
  }
  func.func @transform_1(%arg0: i32) -> (i32, i32, i32) {
    %c0_i32 = arith.constant 0 : i32
    %c0_i32_0 = arith.constant 0 : i32
    %c0_i32_1 = arith.constant 0 : i32
    return %arg0, %c0_i32, %c0_i32_0 : i32, i32, i32
  }
  func.func @transform_2(%arg0: i32) -> (i32, i32) {
    %c0_i32 = arith.constant 0 : i32
    %c0_i32_0 = arith.constant 0 : i32
    return %arg0, %c0_i32 : i32, i32
  }
  func.func @transform_3(%arg0: i32) -> (i32, i32) {
    %c0_i32 = arith.constant 0 : i32
    %c0_i32_0 = arith.constant 0 : i32
    %c0_i32_1 = arith.constant 0 : i32
    return %c0_i32, %c0_i32_0 : i32, i32
  }
  func.func @transform_4(%arg0: i32) -> (i32, i32) {
    %c0_i32 = arith.constant 0 : i32
    %c0_i32_0 = arith.constant 0 : i32
    return %arg0, %c0_i32 : i32, i32
  }
  func.func @transform_5(%arg0: i32) -> (i32, i32, i32) {
    %c0_i32 = arith.constant 0 : i32
    %c0_i32_0 = arith.constant 0 : i32
    %c0_i32_1 = arith.constant 0 : i32
    return %arg0, %c0_i32, %c0_i32_0 : i32, i32, i32
  }
}

</mosaic_0001>

<bundles_post_ra>
// kernel: squeeze.34
= control target key start
LH: loop header
LB: loop body
LE: loop exit
PB: predicated region body
PF: predicated region fallthrough
CT: control target
= control target key end

     0   :  { %s37_s8 = smov 104   ;;  %vm7_vm0 = vcmask 64512   ;;  %s38_s9 = smov 112   ;;  %s55_s0 = inlined_call_operand.vmem [shape: f32[32], index: 0, kind: input, shape index: {}]   ;;  %s56_s1 = inlined_call_operand.vmem [shape: f32[4,8], index: 1, kind: output, shape index: {}]  }
   0x1   :  { %v4_v0 = vld [vmem:[%s55_s0] sm:$0x1]  ;;  %s36_s0 = smov 120  }
   0x2   :  { %5 = vst [vmem:[#allocation1] sm:$0x1] %v4_v0 }
   0x9   :  { %v9_v1 = vld [vmem:[#allocation1] sm:$0x1]  }
   0xa   :  { %v21_v2 = vld [vmem:[#allocation1] sm:$0x1]   ;;  %10 = vrot.lane.b32.xlu0 %v9_v1, %s36_s0 }
   0xb   :  { %22 = vrot.lane.b32.xlu1 %v21_v2, %s37_s8  ;;  %v6_v3 = vld [vmem:[#allocation1] sm:$0x1]  }
   0xc   :  { %v15_v4 = vld [vmem:[#allocation1] sm:$0x1]   ;;  %8 = vst.msk [vmem:[#allocation0] sm:$0x1] %vm7_vm0, %v6_v3  }
   0xe   :  { %16 = vrot.lane.b32.xlu0 %v15_v4, %s38_s9 }
  0x7c   :  { %v11_v5 = vpop.permute.xlu0 %10  }
  0x7d   :  { %v23_v6 = vpop.permute.xlu1 %22   ;;  %14 = vst.msk [vmem:[#allocation0 + $0x1] sm:$0x1] %vm7_vm0, %v11_v5  }
  0x7e   :  { %26 = vst.msk [vmem:[#allocation0 + $0x3] sm:$0x1] %vm7_vm0, %v23_v6  }
  0x80   :  { %v17_v7 = vpop.permute.xlu0 %16  }
  0x81   :  { %20 = vst.msk [vmem:[#allocation0 + $0x2] sm:$0x1] %vm7_vm0, %v17_v7  }
  0x88   :  { %v30_v8 = vld [vmem:[#allocation0] sm:$0xf] }
  0x89   :  { %32 = vst [vmem:[%s56_s1] sm:$0xf] %v30_v8 }

// kernel: decoder_block_forward.1
= control target key start
LH: loop header
LB: loop body
LE: loop exit
PB: predicated region body
PF: predicated region fallthrough
CT: control target
= control target key end

     0   :  { %s3128_s18 = smov 0   ;;  %s4866_s0 = inlined_call_operand.vmem [shape: bf16[710,4], index: 0, kind: input, shape index: {}]   ;;  %s4867_s1 = inlined_call_operand.vmem [shape: bf16[2,38,4], index: 1, kind: input, shape index: {}]   ;;  %s4868_s2 = inlined_call_operand.vmem [shape: f32[672,1], index: 2, kind: input, shape index: {}]   ;;  %s4869_s3 = inlined_call_operand.vmem [shape: bf16[36,32], index: 3, kind: input, shape index: {}]   ;;  %s4870_s4 = inlined_call_operand.vmem [shape: bf16[672,32], index: 4, kind: output, shape index: {0}]   ;;  %s4871_s5 = inlined_call_operand.vmem [shape: f32[2,2,32], index: 5, kind: output, shape index: {1}]  }
   0x1 LB: > { %s3134_s19 = sadd.s32 4294967295, %s3085_s18   ;;  %p2756_p0 = scmp.ge.s32.totalorder %s3085_s18, 1  ;;  %s3085_s18 = sphi %s3128_s18, %s16_s18  }
   0x2   : > { %p220_p1 = scmp.lt.s32.totalorder %s3085_s18, 3 }
   0x4   : > { %p221_p2 = pnand %p2756_p0, %p220_p1 }
   0x6   : > { %224 = sbr.rel (%p221_p2) target bundleno = 714 (0x2ca), region = 36 }
   0xd   : > { %s3139_s20 = smul.u32 42, %s3134_s19  ;;  %vm509_vm0 = vsmask.f32 7424  ;;  %p280_p4 = scmp.lt.s32.totalorder %s3134_s19, 1  ;;  %vm724_vm1 = vcmask 1046528   ;;  %vm1749_vm4 = vcmask 1041408  }
   0xe   : > { %s3087_s26 = smov 4   ;;  %vm854_vm2 = vsmask.f32 6400  ;;  %vm1121_vm3 = vsmask.f32 5376  ;;  %s3088_s6 = smov 8  }
   0xf   : > { %p271_p3 = scmp.lt.s32.totalorder %s3139_s20, 88  ;;  %s5019_s19 = smov (!%p280_p4, %s3134_s19), 1  ;;  %vm991_vm5 = vcmask 1045504   ;;  %vm3091_vm6 = vmmov 0   ;;  %vm1256_vm7 = vcmask 1044480   ;;  %vm1342_vm8 = vcmask 31744  }
  0x10   : > { %s3016_s27 = smul.u32 20, %s5019_s19  ;;  %s3090_s13 = smov 12   ;;  %vm1385_vm9 = vcmask 64512   ;;  %vm1428_vm10 = vcmask 97280   ;;  %vm1471_vm11 = vcmask 130048   ;;  %vm1514_vm12 = vcmask 162816  }
  0x11   : > { %s272_s21 = scalar_select %p271_p3, %s3139_s20, 88  ;;  %vm1557_vm13 = vcmask 195584   ;;  %vm1600_vm14 = vcmask 228352   ;;  %vm1643_vm15 = vcmask 261120  }
  0x12   : > { %s3352_s30 = scalar_lea.vmem %s4867_s1, %s3016_s27  ;;  %s3092_s14 = smov 20  }
  0x13   : > { %s2757_s22 = sshll.u32 %s272_s21, 2  ;;  %s3093_s15 = smov 16  }
  0x14   : > { %s3146_s25 = scalar_lea.vmem %s4866_s0, %s2757_s22  ;;  %s3094_s16 = smov 28  }
  0x15   : > { %v3149_v0 = vld [vmem:[%s3146_s25 + $0x10] sm:$0xff]   ;;  %v3152_v1 = vld [vmem:[%s3146_s25 + $0x18] sm:$0xff]   ;;  %v3165_v5 = vld [vmem:[%s3146_s25] sm:$0xff]   ;;  %s3095_s17 = smov 24   ;;  %s3096_s21 = smov 32  }
  0x16   : > { %4936 = vst [vmem:[#allocation2_spill] sm:$0xff] %v3149_v0  ;;  %v3156_v2 = vshll.u32 %v3149_v0, 16  ;;  %v3159_v3 = vshrl.u32 %v3149_v0, 16  ;;  %v3162_v4 = vshll.u32 %v3152_v1, 16  ;;  %v3168_v6 = vld [vmem:[%s3146_s25 + $0x8] sm:$0xff]   ;;  %v3171_v7 = vshrl.u32 %v3152_v1, 16 }
  0x17   : > { %v511_v10 = vshrl.u32 %v3165_v5, 16  ;;  %v513_v11 = vshll.u32 %v3165_v5, 16  ;;  %v3178_v12 = vld [vmem:[%s3146_s25 + $0x20] sm:$0xff]   ;;  %v3181_v13 = vld [vmem:[%s3146_s25 + $0x28] sm:$0xff]   ;;  %v4872_v14 = vshll.u32 %v3168_v6, 16  ;;  %v4873_v15 = vshrl.u32 %v3168_v6, 16 }
  0x18   : > { %v528_v8 = vrot.slane %v3156_v2, 1  ;;  %v536_v9 = vrot.slane %v3162_v4, 1  ;;  %v3188_v19 = vshll.u32 %v3178_v12, 16  ;;  %v3193_v21 = vld [vmem:[%s3146_s25 + $0x30] sm:$0xff]   ;;  %v3196_v22 = vshll.u32 %v3181_v13, 16  ;;  %v3205_v25 = vld [vmem:[%s3146_s25 + $0x38] sm:$0xff]  }
  0x19   : > { %v515_v17 = vrot.slane %v513_v11, 1  ;;  %v520_v20 = vrot.slane %v4872_v14, 1  ;;  %v3199_v23 = vshrl.u32 %v3181_v13, 16  ;;  %v3202_v24 = vshrl.u32 %v3178_v12, 16  ;;  %v3210_v29 = vld [vmem:[%s3146_s25 + $0x40] sm:$0xff]   ;;  %v3225_v36 = vld [vmem:[%s3146_s25 + $0x48] sm:$0xff]  }
  0x1a   : > { %v532_v16 = vor.u32 %v3159_v3, %v528_v8  ;;  %v540_v18 = vor.u32 %v3171_v7, %v536_v9  ;;  %v544_v28 = vrot.slane %v3188_v19, 1  ;;  %v552_v31 = vrot.slane %v3196_v22, 1  ;;  %4937 = vst [vmem:[#allocation3_spill] sm:$0xff] %v3225_v36  ;;  %v3243_v45 = vld [vmem:[%s3146_s25 + $0x50] sm:$0xff]   ;;  %v3253_v48 = vld [vmem:[%s3146_s25 + $0x58] sm:$0xff]   ;;  %v3267_v55 = vld [vmem:[%s3146_s25 + $0x60] sm:$0xff]  }
  0x1b   : > { %v516_v27 = vor.u32 %v515_v17, %v511_v10  ;;  %v524_v30 = vor.u32 %v4873_v15, %v520_v20  ;;  %v3217_v32 = vshll.u32 %v3193_v21, 16  ;;  %v3222_v35 = vshll.u32 %v3205_v25, 16  ;;  %4938 = vst [vmem:[#allocation4_spill] sm:$0xff] %v3243_v45  ;;  %4939 = vst [vmem:[#allocation5_spill] sm:$0xff] %v3253_v48  ;;  %v3273_v57 = vld [vmem:[%s3146_s25 + $0x68] sm:$0xff]   ;;  %v3286_v61 = vld [vmem:[%s3146_s25 + $0x70] sm:$0xff]  }
  0x1c   : > { %v537_v26 = vsel %vm509_vm0, %v532_v16, %v536_v9  ;;  %v545_v34 = vsel %vm509_vm0, %v540_v18, %v544_v28  ;;  %v556_v37 = vor.u32 %v3199_v23, %v552_v31  ;;  %v548_v39 = vor.u32 %v3202_v24, %v544_v28  ;;  %v3315_v28 = vld [vmem:[%s3146_s25 + $0x80] sm:$0xff]   ;;  %p286_p5 = scmp.lt.s32.totalorder %s3139_s20, 83 }
  0x1d   : > { %686 = vrot.lane.b32.xlu1 %v537_v26, %s3087_s26  ;;  %v521_v33 = vsel %vm509_vm0, %v516_v27, %v520_v20  ;;  %v560_v38 = vrot.slane %v3217_v32, 1  ;;  %v3232_v40 = vshrl.u32 %v3205_v25, 16  ;;  %v529_v41 = vsel %vm509_vm0, %v524_v30, %v528_v8  ;;  %v3312_v27 = vld [vmem:[%s3146_s25 + $0x78] sm:$0xff]  }
  0x1e   : > { %682 = vrot.lane.b32.xlu0 %v521_v33, %s3087_s26  ;;  %v568_v42 = vrot.slane %v3222_v35, 1  ;;  %v3237_v43 = vshll.u32 %v3210_v29, 16  ;;  %v3240_v44 = vshrl.u32 %v3193_v21, 16  ;;  %v3247_v46 = vshll.u32 %v3225_v36, 16  ;;  %4945 = vst [vmem:[#allocation11_spill] sm:$0xff] %v3312_v27  ;;  %s5021_s20 = smov (!%p286_p5, %s3139_s20), 83 }
  0x1f   : > { %v3250_v47 = vshrl.u32 %v3225_v36, 16  ;;  %v561_v49 = vsel %vm509_vm0, %v556_v37, %v560_v38  ;;  %v3259_v52 = vshll.u32 %v3243_v45, 16  ;;  %v3264_v54 = vshrl.u32 %v3210_v29, 16  ;;  %s2759_s22 = sshll.u32 %s5021_s20, 3 }
  0x20   : > { %v572_v50 = vor.u32 %v3232_v40, %v568_v42  ;;  %v576_v51 = vrot.slane %v3237_v43, 1  ;;  %v584_v53 = vrot.slane %v3247_v46, 1  ;;  %v3270_v56 = vshll.u32 %v3253_v48, 16 }
  0x21   : > { %688 = vrot.lane.b32.xlu1 %v545_v34, %s3087_s26  ;;  %4940 = vst [vmem:[#allocation6_spill] sm:$0xff] %v3259_v52  ;;  %v553_v58 = vsel %vm509_vm0, %v548_v39, %v552_v31  ;;  %v564_v59 = vor.u32 %v3240_v44, %v560_v38  ;;  %v3283_v60 = vshrl.u32 %v3253_v48, 16  ;;  %v592_v62 = vrot.slane %v3259_v52, 1  ;;  %v3321_v31 = vld [vmem:[%s3146_s25 + $0x88] sm:$0xff]  }
  0x22   : > { %684 = vrot.lane.b32.xlu0 %v529_v41, %s3087_s26  ;;  %4941 = vst [vmem:[#allocation7_spill] sm:$0xff] %v3270_v56  ;;  %v3291_v63 = vshll.u32 %v3267_v55, 16  ;;  %v577_v8 = vsel %vm509_vm0, %v572_v50, %v576_v51  ;;  %v588_v9 = vor.u32 %v3250_v47, %v584_v53  ;;  %v600_v10 = vrot.slane %v3270_v56, 1 }
  0x23   : > { %4942 = vst [vmem:[#allocation8_spill] sm:$0xff] %v3283_v60  ;;  %v3297_v11 = vshll.u32 %v3273_v57, 16  ;;  %v3301_v16 = vshrl.u32 %v3243_v45, 16  ;;  %v569_v17 = vsel %vm509_vm0, %v564_v59, %v568_v42  ;;  %v580_v18 = vor.u32 %v3264_v54, %v576_v51 }
  0x24   : > { %4943 = vst [vmem:[#allocation9_spill] sm:$0xff] %v3291_v63  ;;  %v3306_v20 = vshrl.u32 %v3273_v57, 16  ;;  %v3309_v26 = vshll.u32 %v3286_v61, 16  ;;  %v608_v30 = vrot.slane %v3291_v63, 1  ;;  %v593_v33 = vsel %vm509_vm0, %v588_v9, %v592_v62  ;;  %v3358_v9 = vld [vmem:[%s3146_s25 + $0x98] sm:$0xff]  }
  0x25   : > { %692 = vrot.lane.b32.xlu1 %v561_v49, %s3087_s26  ;;  %4944 = vst [vmem:[#allocation10_spill] sm:$0xff] %v3301_v16  ;;  %v604_v34 = vor.u32 %v3283_v60, %v600_v10  ;;  %v616_v37 = vrot.slane %v3297_v11, 1  ;;  %v3327_v38 = vshll.u32 %v3312_v27, 16  ;;  %v585_v39 = vsel %vm509_vm0, %v580_v18, %v584_v53 }
  0x26   : > { %690 = vrot.lane.b32.xlu0 %v553_v58, %s3087_s26  ;;  %v596_v41 = vor.u32 %v3301_v16, %v592_v62  ;;  %v624_v42 = vrot.slane %v3309_v26, 1  ;;  %v3334_v49 = vshrl.u32 %v3267_v55, 16  ;;  %v3338_v50 = vshrl.u32 %v3312_v27, 16  ;;  %v3344_v58 = vld [vmem:[%s3146_s25 + $0x90] sm:$0xff]  }
  0x27   : > { %v3341_v51 = vshll.u32 %v3315_v28, 16  ;;  %v3347_v59 = vshll.u32 %v3321_v31, 16  ;;  %v609_v53 = vsel %vm509_vm0, %v604_v34, %v608_v30  ;;  %v620_v62 = vor.u32 %v3306_v20, %v616_v37 }
  0x28   : > { %4946 = vst [vmem:[#allocation12_spill] sm:$0xff] %v3334_v49  ;;  %v612_v18 = vor.u32 %v3334_v49, %v608_v30  ;;  %v3369_v34 = vshrl.u32 %v3321_v31, 16  ;;  %v3372_v15 = vshll.u32 %v3344_v58, 16  ;;  %v3378_v30 = vld [vmem:[%s3146_s25 + $0xa0] sm:$0xff]   ;;  %v3387_v60 = vshrl.u32 %v3315_v28, 16 }
  0x29   : > { %696 = vrot.lane.b32.xlu1 %v577_v8, %s3087_s26  ;;  %4947 = vst [vmem:[#allocation13_spill] sm:$0xff] %v3341_v51  ;;  %4948 = vst [vmem:[#allocation14_spill] sm:$0xff] %v3347_v59  ;;  %v632_v8 = vrot.slane %v3327_v38, 1  ;;  %v648_v14 = vrot.slane %v3347_v59, 1  ;;  %v625_v56 = vsel %vm509_vm0, %v620_v62, %v624_v42  ;;  %v3393_v52 = vshrl.u32 %v3358_v9, 16 }
  0x2a   : > { %694 = vrot.lane.b32.xlu0 %v569_v17, %s3087_s26  ;;  %v601_v17 = vsel %vm509_vm0, %v596_v41, %v600_v10  ;;  %4949 = vst [vmem:[#allocation15_spill] sm:$0xff] %v3369_v34  ;;  %4950 = vst [vmem:[#allocation16_spill] sm:$0xff] %v3372_v15  ;;  %v640_v10 = vrot.slane %v3341_v51, 1  ;;  %v3381_v41 = vshll.u32 %v3358_v9, 16  ;;  %v656_v51 = vrot.slane %v3372_v15, 1  ;;  %v3407_v15 = vld [vmem:[%s3352_s30] sm:$0xff]  }
  0x2b   : > { %4952 = vst [vmem:[#allocation18_spill] sm:$0xff] %v3387_v60  ;;  %v652_v62 = vor.u32 %v3369_v34, %v648_v14  ;;  %4953 = vst [vmem:[#allocation19_spill] sm:$0xff] %v3393_v52 }
  0x2c   : > { %4951 = vst [vmem:[#allocation17_spill] sm:$0xff] %v3381_v41  ;;  %4956 = vst [vmem:[#allocation22_spill] sm:$0xff] %v3407_v15 }
  0x2d   : > { %700 = vrot.lane.b32.xlu1 %v593_v33, %s3087_s26  ;;  %v3364_v33 = vshrl.u32 %v3286_v61, 16 }
  0x2e   : > { %698 = vrot.lane.b32.xlu0 %v585_v39, %s3087_s26  ;;  %v636_v39 = vor.u32 %v3338_v50, %v632_v8 }
  0x2f   : > { %v628_v59 = vor.u32 %v3364_v33, %v624_v42  ;;  %v3401_v42 = vshrl.u32 %v3344_v58, 16 }
  0x30   : > { %v641_v16 = vsel %vm509_vm0, %v636_v39, %v640_v10  ;;  %v657_v39 = vsel %vm509_vm0, %v652_v62, %v656_v51  ;;  %v4959_v62 = vshrl.u32 %v3168_v6, 16 }
  0x31   : > { %704 = vrot.lane.b32.xlu1 %v609_v53, %s3087_s26  ;;  %v617_v53 = vsel %vm509_vm0, %v612_v18, %v616_v37  ;;  %v3398_v37 = vshll.u32 %v3378_v30, 16  ;;  %4955 = vst [vmem:[#allocation21_spill] sm:$0xff] %v3401_v42  ;;  %v644_v18 = vor.u32 %v3387_v60, %v640_v10  ;;  %v660_v49 = vor.u32 %v3401_v42, %v656_v51 }
  0x32   : > { %702 = vrot.lane.b32.xlu0 %v601_v17, %s3087_s26  ;;  %v664_v17 = vrot.slane %v3381_v41, 1  ;;  %v725_v41 = vrot.slane %v3165_v5, 1  ;;  %v862_v60 = vrot.slane %v3171_v7, 1 }
  0x33   : > { %4954 = vst [vmem:[#allocation20_spill] sm:$0xff] %v3398_v37  ;;  %v672_v63 = vrot.slane %v3398_v37, 1 }
  0x34   : > { %v668_v34 = vor.u32 %v3393_v52, %v664_v17  ;;  %v665_v51 = vsel %vm509_vm0, %v660_v49, %v664_v17  ;;  %v859_v52 = vrot.slane %v3156_v2, 2  ;;  %v1122_v49 = vrot.slane %v3159_v3, 2 }
  0x35   : > { %708 = vrot.lane.b32.xlu1 %v625_v56, %s3087_s26  ;;  %v633_v56 = vsel %vm509_vm0, %v628_v59, %v632_v8  ;;  %v3418_v59 = vshrl.u32 %v3378_v30, 16  ;;  %v3422_v8 = vshll.u32 %v3407_v15, 16  ;;  %v1125_v17 = vrot.slane %v3171_v7, 2 }
  0x36   : > { %706 = vrot.lane.b32.xlu0 %v617_v53, %s3087_s26  ;;  %v726_v53 = vrot.slane %v3168_v6, 1  ;;  %v673_v5 = vsel %vm509_vm0, %v668_v34, %v672_v63 }
  0x37   : > { %4957 = vst [vmem:[#allocation23_spill] sm:$0xff] %v3418_v59  ;;  %4958 = vst [vmem:[#allocation24_spill] sm:$0xff] %v3422_v8  ;;  %v680_v34 = vrot.slane %v3422_v8, 1  ;;  %v863_v8 = vrot.slane %v3162_v4, 2 }
  0x38   : > { %v727_v10 = vsel %vm724_vm1, %v725_v41, %v726_v53  ;;  %v1123_v41 = vrot.slane %v3156_v2, 3 }
  0x39   : > { %712 = vrot.lane.b32.xlu1 %v641_v16, %s3087_s26  ;;  %v649_v16 = vsel %vm509_vm0, %v644_v18, %v648_v14  ;;  %v676_v14 = vor.u32 %v3418_v59, %v672_v63  ;;  %v4960_v18 = vshll.u32 %v3168_v6, 16  ;;  %v730_v59 = vrot.slane %v3152_v1, 1 }
  0x3a   : > { %710 = vrot.lane.b32.xlu0 %v633_v56, %s3087_s26  ;;  %v855_v56 = vrot.slane %v4959_v62, 1  ;;  %v1124_v42 = vor.u32 %v1123_v41, %v1122_v49  ;;  %v870_v49 = vrot.slane %v3199_v23, 1  ;;  %v871_v41 = vrot.slane %v3196_v22, 2 }
  0x3b   : > { %v856_v37 = vrot.slane %v4960_v18, 2  ;;  %v1126_v18 = vrot.slane %v3162_v4, 3  ;;  %v1130_v4 = vrot.slane %v3188_v19, 3 }
  0x3d   : > { %716 = vrot.lane.b32.xlu1 %v657_v39, %s3087_s26  ;;  %v858_v39 = vrot.slane %v3159_v3, 1  ;;  %v857_v63 = vor.u32 %v856_v37, %v855_v56  ;;  %v1127_v3 = vor.u32 %v1126_v18, %v1125_v17  ;;  %v732_v37 = vrot.slane %v3178_v12, 1 }
  0x3e   : > { %714 = vrot.lane.b32.xlu0 %v649_v16, %s3087_s26  ;;  %v728_v16 = vrot.slane %v3149_v0, 1  ;;  %v864_v0 = vor.u32 %v863_v8, %v862_v60  ;;  %v867_v8 = vrot.slane %v3188_v19, 2  ;;  %v736_v19 = vrot.slane %v3193_v21, 1 }
  0x3f   : > { %v860_v62 = vor.u32 %v859_v52, %v858_v39  ;;  %v1129_v52 = vrot.slane %v3202_v24, 2  ;;  %v3455_v7 = vsel %vm1121_vm3, %v1124_v42, %v1127_v3  ;;  %v1133_v39 = vrot.slane %v3199_v23, 2 }
  0x40   : > { %v3460_v56 = vsel %vm724_vm1, %v728_v16, %v730_v59  ;;  %v738_v17 = vrot.slane %v3205_v25, 1  ;;  %v872_v23 = vor.u32 %v871_v41, %v870_v49  ;;  %v1137_v18 = vrot.slane %v3240_v44, 2 }
  0x41   : > { %720 = vrot.lane.b32.xlu1 %v673_v5, %s3087_s26  ;;  %v3448_v2 = vsel %vm854_vm2, %v857_v63, %v860_v62  ;;  %v681_v5 = vsel %vm509_vm0, %v676_v14, %v680_v34  ;;  %v734_v14 = vrot.slane %v3181_v13, 1  ;;  %v3464_v60 = vsel %vm854_vm2, %v860_v62, %v864_v0 }
  0x42   : > { %718 = vrot.lane.b32.xlu0 %v665_v51, %s3087_s26  ;;  %v866_v51 = vrot.slane %v3202_v24, 1  ;;  %v1131_v42 = vor.u32 %v1130_v4, %v1129_v52  ;;  %v1134_v24 = vrot.slane %v3196_v22, 3  ;;  %v3491_v22 = vsel %vm724_vm1, %v730_v59, %v732_v37 }
  0x43   : > { %v740_v52 = vrot.slane %v3210_v29, 1  ;;  %v3507_v59 = vsel %vm724_vm1, %v736_v19, %v738_v17  ;;  %v3520_v49 = vsel %vm724_vm1, %v734_v14, %v736_v19  ;;  %vm1706_vm0 = vcmask 293888  }
  0x44   : > { %v868_v34 = vor.u32 %v867_v8, %v866_v51  ;;  %v1135_v62 = vor.u32 %v1134_v24, %v1133_v39  ;;  %v875_v51 = vrot.slane %v3217_v32, 2  ;;  %v878_v24 = vrot.slane %v3232_v40, 1 }
  0x45   : > { %768 = vrot.lane.b32.xlu1 %v727_v10, %s3088_s6  ;;  %v3469_v10 = vsel %vm724_vm1, %v726_v53, %v728_v16  ;;  %v3480_v53 = vsel %vm1121_vm3, %v1127_v3, %v1131_v42  ;;  %v3483_v16 = vsel %vm724_vm1, %v732_v37, %v734_v14  ;;  %v874_v3 = vrot.slane %v3240_v44, 1 }
  0x46   : > { %722 = vrot.lane.b32.xlu0 %v681_v5, %s3087_s26  ;;  %v3486_v63 = vsel %vm854_vm2, %v864_v0, %v868_v34  ;;  %v1138_v5 = vrot.slane %v3217_v32, 3  ;;  %v3498_v4 = vsel %vm1121_vm3, %v1131_v42, %v1135_v62  ;;  %v3501_v0 = vsel %vm854_vm2, %v868_v34, %v872_v23  ;;  %s2760_s26 = sshll.u32 %s5021_s20, 2  ;;  %s2761_s20 = sshll.u32 %s5019_s19, 1 }
  0x47   : > { %v742_v37 = vrot.slane %v3225_v36, 1  ;;  %v1141_v44 = vrot.slane %v3232_v40, 2  ;;  %v876_v39 = vor.u32 %v875_v51, %v874_v3  ;;  %v1142_v42 = vrot.slane %v3222_v35, 3  ;;  %s4601_s29 = scalar_lea.vmem %s4870_s4, %s2760_s26  ;;  %s300_s7 = scalar_lea.vmem %s4871_s5, %s2761_s20 }
  0x48   : > { %v1139_v8 = vor.u32 %v1138_v5, %v1137_v18  ;;  %v879_v34 = vrot.slane %v3222_v35, 2  ;;  %v744_v40 = vrot.slane %v3243_v45, 1  ;;  %v1145_v35 = vrot.slane %v3264_v54, 2 }
  0x49   : > { %772 = vrot.lane.b32.xlu1 %v3460_v56, %s3088_s6  ;;  %v3523_v41 = vsel %vm854_vm2, %v872_v23, %v876_v39  ;;  %v1143_v18 = vor.u32 %v1142_v42, %v1141_v44  ;;  %v1146_v3 = vrot.slane %v3237_v43, 3  ;;  %v746_v14 = vrot.slane %v3253_v48, 1 }
  0x4a   : > { %770 = vrot.lane.b32.xlu0 %v3469_v10, %s3088_s6  ;;  %v3517_v32 = vsel %vm1121_vm3, %v1135_v62, %v1139_v8  ;;  %v880_v5 = vor.u32 %v879_v34, %v878_v24  ;;  %v3531_v62 = vsel %vm724_vm1, %v740_v52, %v742_v37  ;;  %v902_v44 = vrot.slane %v3306_v20, 1 }
  0x4b   : > { %4961 = vst [vmem:[#allocation25_spill] sm:$0xff] %v3531_v62  ;;  %v3535_v19 = vsel %vm1121_vm3, %v1139_v8, %v1143_v18  ;;  %v1147_v51 = vor.u32 %v1146_v3, %v1145_v35  ;;  %v903_v42 = vrot.slane %v3297_v11, 2  ;;  %v3545_v24 = vsel %vm724_vm1, %v738_v17, %v740_v52 }
  0x4c   : > { %v3538_v23 = vsel %vm854_vm2, %v876_v39, %v880_v5  ;;  %v882_v34 = vrot.slane %v3264_v54, 1  ;;  %v883_v48 = vrot.slane %v3237_v43, 2  ;;  %v748_v8 = vrot.slane %v3267_v55, 1 }
  0x4d   : > { %776 = vrot.lane.b32.xlu1 %v3483_v16, %s3088_s6  ;;  %v3553_v39 = vsel %vm1121_vm3, %v1143_v18, %v1147_v51  ;;  %v3555_v35 = vor.u32 %v903_v42, %v902_v44  ;;  %v3558_v3 = vsel %vm724_vm1, %v744_v40, %v746_v14  ;;  %v750_v17 = vrot.slane %v3273_v57, 1 }
  0x4e   : > { %774 = vrot.lane.b32.xlu0 %v3491_v22, %s3088_s6  ;;  %4962 = vst [vmem:[#allocation26_spill] sm:$0xff] %v3558_v3  ;;  %v884_v52 = vor.u32 %v883_v48, %v882_v34  ;;  %v1165_v54 = vrot.slane %v3306_v20, 2  ;;  %v1166_v43 = vrot.slane %v3297_v11, 3  ;;  %v3567_v18 = vsel %vm724_vm1, %v742_v37, %v744_v40 }
  0x4f   : > { %v1170_v42 = vrot.slane %v3309_v26, 3  ;;  %v1149_v45 = vrot.slane %v3250_v47, 2  ;;  %v752_v48 = vrot.slane %v3286_v61, 1  ;;  %v754_v20 = vrot.slane %v3312_v27, 1 }
  0x50   : > { %v3570_v44 = vsel %vm854_vm2, %v880_v5, %v884_v52  ;;  %v3578_v11 = vor.u32 %v1166_v43, %v1165_v54  ;;  %v1150_v34 = vrot.slane %v3247_v46, 3  ;;  %v3582_v37 = vsel %vm724_vm1, %v748_v8, %v750_v17 }
  0x51   : > { %780 = vrot.lane.b32.xlu1 %v3507_v59, %s3088_s6  ;;  %v906_v40 = vrot.slane %v3364_v33, 1  ;;  %v907_v36 = vrot.slane %v3309_v26, 2  ;;  %v886_v27 = vrot.slane %v3250_v47, 1  ;;  %v887_v54 = vrot.slane %v3247_v46, 2 }
  0x52   : > { %778 = vrot.lane.b32.xlu0 %v3520_v49, %s3088_s6  ;;  %4963 = vst [vmem:[#allocation27_spill] sm:$0xff] %v3578_v11  ;;  %v3595_v43 = vsel %vm724_vm1, %v746_v14, %v748_v8  ;;  %v758_v26 = vrot.slane %v3321_v31, 1  ;;  %v3608_v47 = vsel %vm724_vm1, %v752_v48, %v754_v20  ;;  %v1174_v14 = vrot.slane %v3327_v38, 3 }
  0x53   : > { %4964 = vst [vmem:[#allocation28_spill] sm:$0xff] %v3595_v43  ;;  %v908_v11 = vor.u32 %v907_v36, %v906_v40  ;;  %v1173_v36 = vrot.slane %v3338_v50, 2  ;;  %v762_v40 = vrot.slane %v3358_v9, 1 }
  0x55   : > { %784 = vrot.lane.b32.xlu1 %v3531_v62, %s3088_s6  ;;  %v1169_v62 = vrot.slane %v3364_v33, 2  ;;  %v756_v33 = vrot.slane %v3315_v28, 1  ;;  %v3612_v46 = vsel %vm854_vm2, %v3555_v35, %v908_v11  ;;  %v3625_v8 = vor.u32 %v1174_v14, %v1173_v36  ;;  %v3060_v14 = vld [vmem:[%s4869_s3] sm:$0xff]  }
  0x56   : > { %782 = vrot.lane.b32.xlu0 %v3545_v24, %s3088_s6  ;;  %v4923_v36 = vrot.slane %v3407_v15, 1 }
  0x57   : > { %v3584_v5 = vor.u32 %v1170_v42, %v1169_v62  ;;  %v3630_v42 = vsel %vm724_vm1, %v756_v33, %v758_v26 }
  0x58   : > { %4965 = vst [vmem:[#allocation29_spill] sm:$0xff] %v3630_v42 }
  0x59   : > { %788 = vrot.lane.b32.xlu1 %v3558_v3, %s3088_s6  ;;  %v3590_v3 = vor.u32 %v1150_v34, %v1149_v45  ;;  %v3605_v45 = vor.u32 %v887_v54, %v886_v27  ;;  %v3623_v27 = vsel %vm724_vm1, %v750_v17, %v752_v48  ;;  %v760_v34 = vrot.slane %v3344_v58, 1 }
  0x5a   : > { %786 = vrot.lane.b32.xlu0 %v3567_v18, %s3088_s6  ;;  %v3642_v17 = vsel %vm724_vm1, %v754_v20, %v756_v33  ;;  %v764_v54 = vrot.slane %v3378_v30, 1 }
  0x5b   : > { %v3603_v62 = vsel %vm1121_vm3, %v1147_v51, %v3590_v3  ;;  %v3620_v51 = vsel %vm854_vm2, %v884_v52, %v3605_v45  ;;  %v3637_v52 = vsel %vm1121_vm3, %v3584_v5, %v3625_v8  ;;  %v3647_v48 = vsel %vm724_vm1, %v760_v34, %v762_v40 }
  0x5c   : > { %4966 = vst [vmem:[#allocation30_spill] sm:$0xff] %v3647_v48  ;;  %v3658_v20 = vsel %vm724_vm1, %v758_v26, %v760_v34  ;;  %v3667_v33 = vsel %vm724_vm1, %v764_v54, %v4923_v36  ;;  %v910_v26 = vrot.slane %v3338_v50, 1  ;;  %v911_v34 = vrot.slane %v3327_v38, 2  ;;  %v3062_v38 = vld [vmem:[%s4869_s3 + $0x10] ss:$0 sps:$4 sm:$0x33]  }
  0x5d   : > { %792 = vrot.lane.b32.xlu1 %v3582_v37, %s3088_s6  ;;  %4967 = vst [vmem:[#allocation31_spill] sm:$0xff] %v3658_v20  ;;  %4968 = vst [vmem:[#allocation32_spill] sm:$0xff] %v3667_v33  ;;  %v992_v50 = vrot.slane %v3168_v6, 2 }
  0x5e   : > { %790 = vrot.lane.b32.xlu0 %v3595_v43, %s3088_s6  ;;  %v4925_v43 = vmov 0.0   ;;  %v3680_v36 = vor.u32 %v911_v34, %v910_v26  ;;  %v1258_v26 = vrot.slane %v3152_v1, 3 }
  0x5f   : > { %2920 = vmatprep.subr.bf16.mxu0 %v4925_v43  ;;  %3010 = vmatprep.subr.bf16.mxu1 %v4925_v43 }
  0x60   : > { %2921 = vmatpush3.bf16.msra.mxu0 %v3060_v14  ;;  %3013 = vmatpush3.bf16.msra.mxu1 %v3060_v14  ;;  %v4970_v14 = vld [vmem:[#allocation2_spill] sm:$0xff] }
  0x61   : > { %796 = vrot.lane.b32.xlu1 %v3608_v47, %s3088_s6  ;;  %2922 = vmatprep.subr.bf16.mxu0 %v4925_v43  ;;  %v993_v15 = vrot.slane %v4970_v14, 2 }
  0x62   : > { %794 = vrot.lane.b32.xlu0 %v3623_v27, %s3088_s6  ;;  %3011 = vmatprep.subr.bf16.mxu1 %v4925_v43 }
  0x63   : > { %v994_v6 = vsel %vm991_vm5, %v992_v50, %v993_v15  ;;  %2926 = vmatprep.mubr.msk.bf16.mxu0 %vm3091_vm6, %v4925_v43  ;;  %2970 = vmatprep.mubr.msk.bf16.mxu1 %vm3091_vm6, %v4925_v43 }
  0x65   : > { %800 = vrot.lane.b32.xlu1 %v3630_v42, %s3088_s6  ;;  %v3061_v42 = vld [vmem:[%s4869_s3 + $0x8] sm:$0xff]  }
  0x66   : > { %798 = vrot.lane.b32.xlu0 %v3642_v17, %s3088_s6  ;;  %2923 = vmatpush3.bf16.msra.mxu0 %v3061_v42 }
  0x67   : > { %2924 = vmatprep.subr.bf16.mxu0 %v4925_v43  ;;  %3014 = vmatpush3.bf16.msra.mxu1 %v3061_v42  ;;  %v1257_v42 = vrot.slane %v4970_v14, 3 }
  0x68   : > { %3012 = vmatprep.subr.bf16.mxu1 %v4925_v43 }
  0x69   : > { %804 = vrot.lane.b32.xlu1 %v3647_v48, %s3088_s6  ;;  %v3678_v48 = vsel %vm724_vm1, %v762_v40, %v764_v54  ;;  %v3692_v40 = vsel %vm854_vm2, %v908_v11, %v3680_v36  ;;  %v1751_v54 = vsel %vm1749_vm4, %v3062_v38, 0  ;;  %v995_v11 = vrot.slane %v3152_v1, 2 }
  0x6a   : > { %802 = vrot.lane.b32.xlu0 %v3658_v20, %s3088_s6  ;;  %4969 = vst [vmem:[#allocation33_spill] sm:$0xff] %v3678_v48  ;;  %2925 = vmatpush3.bf16.msra.mxu0 %v1751_v54  ;;  %v1259_v34 = vsel %vm1256_vm7, %v1257_v42, %v1258_v26  ;;  %v1003_v42 = vrot.slane %v3205_v25, 2  ;;  %v4977_v20 = vld [vmem:[#allocation3_spill] sm:$0xff] }
  0x6b   : > { %3015 = vmatpush3.bf16.msra.mxu1 %v1751_v54  ;;  %v1264_v54 = vrot.slane %v3193_v21, 3 }
  0x6d   : > { %808 = vrot.lane.b32.xlu1 %v3667_v33, %s3088_s6 }
  0x6e   : > { %806 = vrot.lane.b32.xlu0 %v3678_v48, %s3088_s6  ;;  %v4930_v48 = vrot.slane %v3267_v55, 2 }
  0x71   : > { %814 = vrot.lane.b32.xlu1 %v3460_v56, %s3090_s13  ;;  %v996_v56 = vsel %vm991_vm5, %v993_v15, %v995_v11 }
  0x72   : > { %812 = vrot.lane.b32.xlu0 %v3469_v10, %s3090_s13  ;;  %v997_v10 = vrot.slane %v3178_v12, 2 }
  0x74   : > { %v998_v15 = vsel %vm991_vm5, %v995_v11, %v997_v10 }
  0x75   : > { %1035 = vrot.lane.b32.xlu1 %v994_v6, %s3092_s14 }
  0x76   : > { %949 = vrot.lane.b32.xlu0 %v3448_v2, %s3093_s15  ;;  %v1260_v2 = vrot.slane %v3178_v12, 3 }
  0x78   : > { %v1261_v1 = vsel %vm1256_vm7, %v1258_v26, %v1260_v2 }
  0x79   : > { %1214 = vrot.lane.b32.xlu1 %v3455_v7, %s3094_s16  ;;  %v999_v7 = vrot.slane %v3181_v13, 2 }
  0x7a   : > { %1079 = vrot.lane.b32.xlu0 %v996_v56, %s3095_s17 }
  0x7b   : > { %v1000_v12 = vsel %vm991_vm5, %v997_v10, %v999_v7 }
  0x7d   : > { %951 = vrot.lane.b32.xlu1 %v3464_v60, %s3093_s15  ;;  %v1262_v60 = vrot.slane %v3181_v13, 3 }
  0x7e   : > { %1300 = vrot.lane.b32.xlu0 %v1259_v34, %s3096_s21  ;;  %v1266_v34 = vrot.slane %v3205_v25, 3 }
  0x7f   : > { %v1263_v38 = vsel %vm1256_vm7, %v1260_v2, %v1262_v60 }
  0x81   : > { %1081 = vrot.lane.b32.xlu1 %v998_v15, %s3095_s17 }
  0x82   : > { %1037 = vrot.lane.b32.xlu0 %v996_v56, %s3092_s14 }
  0x85   : > { %1302 = vrot.lane.b32.xlu1 %v1261_v1, %s3096_s21 }
  0x86   : > { %1216 = vrot.lane.b32.xlu0 %v3480_v53, %s3094_s16  ;;  %v1001_v53 = vrot.slane %v3193_v21, 2 }
  0x88   : > { %v1004_v10 = vsel %vm991_vm5, %v1001_v53, %v1003_v42 }
  0x89   : > { %953 = vrot.lane.b32.xlu1 %v3486_v63, %s3093_s15 }
  0x8a   : > { %816 = vrot.lane.b32.xlu0 %v3491_v22, %s3090_s13  ;;  %v1002_v22 = vsel %vm991_vm5, %v999_v7, %v1001_v53  ;;  %v1005_v7 = vrot.slane %v3210_v29, 2 }
  0x8d   : > { %1083 = vrot.lane.b32.xlu1 %v1000_v12, %s3095_s17 }
  0x8e   : > { %1039 = vrot.lane.b32.xlu0 %v998_v15, %s3092_s14 }
  0x8f   : > { %v3739_v50 = vpop.permute.xlu1 %686 }
  0x90   : > { %v3741_v14 = vpop.permute.xlu0 %682 }
  0x91   : > { %1304 = vrot.lane.b32.xlu1 %v1263_v38, %s3096_s21  ;;  %v1268_v38 = vrot.slane %v3210_v29, 3 }
  0x92   : > { %1218 = vrot.lane.b32.xlu0 %v3498_v4, %s3094_s16  ;;  %v1265_v4 = vsel %vm1256_vm7, %v1262_v60, %v1264_v54  ;;  %v1006_v60 = vsel %vm991_vm5, %v1003_v42, %v1005_v7 }
  0x93   : > { %v3747_v13 = vpop.permute.xlu1 %688 }
  0x94   : > { %v3749_v63 = vpop.permute.xlu0 %684 }
  0x95   : > { %955 = vrot.lane.b32.xlu1 %v3501_v0, %s3093_s15 }
  0x96   : > { %818 = vrot.lane.b32.xlu0 %v3483_v16, %s3090_s13 }
  0x97   : > { %v3757_v6 = vpop.permute.xlu1 %692 }
  0x98   : > { %4971 = vst [vmem:[#allocation2_spill] sm:$0xff] %v3757_v6  ;;  %v3759_v11 = vpop.permute.xlu0 %690 }
  0x99   : > { %1085 = vrot.lane.b32.xlu1 %v1002_v22, %s3095_s17 }
  0x9a   : > { %1041 = vrot.lane.b32.xlu0 %v1000_v12, %s3092_s14 }
  0x9b   : > { %v3764_v56 = vpop.permute.xlu1 %696 }
  0x9c   : > { %v695_v0 = vpop.permute.xlu0 %694 }
  0x9d   : > { %1306 = vrot.lane.b32.xlu1 %v1265_v4, %s3096_s21 }
  0x9e   : > { %1220 = vrot.lane.b32.xlu0 %v3517_v32, %s3094_s16  ;;  %v1267_v32 = vsel %vm1256_vm7, %v1264_v54, %v1266_v34  ;;  %v4972_v54 = vld [vmem:[#allocation12_spill] sm:$0xff] }
  0x9f   : > { %v3770_v16 = vpop.permute.xlu1 %700  ;;  %v898_v4 = vrot.slane %v4972_v54, 1 }
  0xa0   : > { %v3772_v26 = vpop.permute.xlu0 %698 }
  0xa1   : > { %957 = vrot.lane.b32.xlu1 %v3523_v41, %s3093_s15 }
  0xa2   : > { %820 = vrot.lane.b32.xlu0 %v3520_v49, %s3090_s13 }
  0xa3   : > { %v3780_v15 = vpop.permute.xlu1 %704 }
  0xa4   : > { %v3782_v2 = vpop.permute.xlu0 %702 }
  0xa5   : > { %1087 = vrot.lane.b32.xlu1 %v1004_v10, %s3095_s17 }
  0xa6   : > { %1043 = vrot.lane.b32.xlu0 %v1002_v22, %s3092_s14 }
  0xa7   : > { %v3787_v1 = vpop.permute.xlu1 %708 }
  0xa8   : > { %v3789_v41 = vpop.permute.xlu0 %706 }
  0xa9   : > { %1308 = vrot.lane.b32.xlu1 %v1267_v32, %s3096_s21  ;;  %v4973_v32 = vld [vmem:[#allocation9_spill] sm:$0xff] }
  0xaa   : > { %1222 = vrot.lane.b32.xlu0 %v3535_v19, %s3094_s16  ;;  %v1269_v19 = vsel %vm1256_vm7, %v1266_v34, %v1268_v38  ;;  %v899_v43 = vrot.slane %v4973_v32, 2 }
  0xab   : > { %v3795_v49 = vpop.permute.xlu1 %712 }
  0xac   : > { %v3797_v12 = vpop.permute.xlu0 %710 }
  0xad   : > { %959 = vrot.lane.b32.xlu1 %v3538_v23, %s3093_s15 }
  0xae   : > { %822 = vrot.lane.b32.xlu0 %v3507_v59, %s3090_s13  ;;  %v3819_v59 = vor.u32 %v899_v43, %v898_v4 }
  0xaf   : > { %v3805_v53 = vpop.permute.xlu1 %716 }
  0xb0   : > { %v3807_v22 = vpop.permute.xlu0 %714  ;;  %4974 = vst [vmem:[#allocation12_spill] sm:$0xff] %v3819_v59 }
  0xb1   : > { %1089 = vrot.lane.b32.xlu1 %v1006_v60, %s3095_s17 }
  0xb2   : > { %1045 = vrot.lane.b32.xlu0 %v1004_v10, %s3092_s14  ;;  %v905_v10 = vsel %vm854_vm2, %v3819_v59, %v3555_v35  ;;  %v4933_v35 = vrot.slane %v3286_v61, 2 }
  0xb3   : > { %v3814_v23 = vpop.permute.xlu1 %720 }
  0xb4   : > { %v3816_v42 = vpop.permute.xlu0 %718 }
  0xb5   : > { %1310 = vrot.lane.b32.xlu1 %v1269_v19, %s3096_s21  ;;  %v1015_v19 = vrot.slane %v3273_v57, 2 }
  0xb6   : > { %1224 = vrot.lane.b32.xlu0 %v3553_v39, %s3094_s16 }
  0xb7   : > { %v3823_v33 = vpop.permute.xlu1 %768 }
  0xb8   : > { %v3825_v34 = vpop.permute.xlu0 %722 }
  0xb9   : > { %834 = vrot.lane.b32.xlu1 %v3582_v37, %s3090_s13  ;;  %v3844_v37 = vsel %vm991_vm5, %v4930_v48, %v1015_v19  ;;  %v1356_v48 = vsel %vm1342_vm8, %v3193_v21, %v695_v0  ;;  %v1280_v0 = vrot.slane %v3286_v61, 3 }
  0xba   : > { %824 = vrot.lane.b32.xlu0 %v3545_v24, %s3090_s13  ;;  %4975 = vst [vmem:[#allocation9_spill] sm:$0xff] %v3844_v37  ;;  %v4934_v24 = vrot.slane %v4977_v20, 2 }
  0xbb   : > { %v3836_v43 = vpop.permute.xlu1 %772 }
  0xbc   : > { %v3838_v39 = vpop.permute.xlu0 %770 }
  0xbd   : > { %971 = vrot.lane.b32.xlu1 %v905_v10, %s3093_s15  ;;  %v1018_v10 = vsel %vm991_vm5, %v1015_v19, %v4933_v35  ;;  %v4978_v19 = vld [vmem:[#allocation27_spill] sm:$0xff] }
  0xbe   : > { %961 = vrot.lane.b32.xlu0 %v3570_v44, %s3093_s15  ;;  %v1172_v35 = vsel %vm1121_vm3, %v4978_v19, %v3584_v5  ;;  %v1358_v5 = vsel %vm1342_vm8, %v3205_v25, %v3764_v56 }
  0xbf   : > { %v3849_v4 = vpop.permute.xlu1 %776 }
  0xc0   : > { %4976 = vst [vmem:[#allocation34_spill] sm:$0xff] %v3849_v4  ;;  %v3852_v6 = vpop.permute.xlu0 %774  ;;  %v1008_v4 = vsel %vm991_vm5, %v1005_v7, %v4934_v24 }
  0xc1   : > { %1057 = vrot.lane.b32.xlu1 %v3844_v37, %s3092_s14 }
  0xc2   : > { %1047 = vrot.lane.b32.xlu0 %v1006_v60, %s3092_s14 }
  0xc3   : > { %v781_v44 = vpop.permute.xlu1 %780 }
  0xc4   : > { %v3863_v59 = vsel %vm1385_vm9, %v1356_v48, %v781_v44  ;;  %v3868_v37 = vpop.permute.xlu0 %778  ;;  %v1360_v48 = vsel %vm1342_vm8, %v3210_v29, %v3772_v26  ;;  %v4935_v44 = vrot.slane %v4977_v20, 3  ;;  %v4979_v29 = vrot.slane %v3273_v57, 3 }
  0xc5   : > { %1101 = vrot.lane.b32.xlu1 %v1018_v10, %s3095_s17 }
  0xc6   : > { %1091 = vrot.lane.b32.xlu0 %v1008_v4, %s3095_s17  ;;  %v1281_v26 = vsel %vm1256_vm7, %v4979_v29, %v1280_v0 }
  0xc7   : > { %v785_v60 = vpop.permute.xlu1 %784 }
  0xc8   : > { %v3881_v7 = vsel %vm1385_vm9, %v1360_v48, %v785_v60  ;;  %v783_v24 = vpop.permute.xlu0 %782  ;;  %v4980_v48 = vld [vmem:[#allocation4_spill] sm:$0xff] }
  0xc9   : > { %1236 = vrot.lane.b32.xlu1 %v1172_v35, %s3094_s16  ;;  %v3889_v21 = vsel %vm1385_vm9, %v1358_v5, %v783_v24  ;;  %v1364_v60 = vsel %vm1342_vm8, %v4980_v48, %v3782_v2  ;;  %v1271_v35 = vsel %vm1256_vm7, %v1268_v38, %v4935_v44  ;;  %v1362_v24 = vsel %vm1342_vm8, %v4977_v20, %v3770_v16  ;;  %v4981_v38 = vld [vmem:[#allocation5_spill] sm:$0xff] }
  0xca   : > { %1226 = vrot.lane.b32.xlu0 %v3603_v62, %s3094_s16  ;;  %v1368_v62 = vsel %vm1342_vm8, %v3267_v55, %v3789_v41  ;;  %v1366_v16 = vsel %vm1342_vm8, %v4981_v38, %v3780_v15  ;;  %v1372_v41 = vsel %vm1342_vm8, %v3286_v61, %v3797_v12  ;;  %v1370_v15 = vsel %vm1342_vm8, %v3273_v57, %v3787_v1 }
  0xcb   : > { %v789_v25 = vpop.permute.xlu1 %788  ;;  %v1376_v38 = vsel %vm1342_vm8, %v3315_v28, %v3807_v22  ;;  %v1009_v1 = vrot.slane %v4980_v48, 2 }
  0xcc   : > { %v3902_v56 = vsel %vm1385_vm9, %v1364_v60, %v789_v25  ;;  %v787_v5 = vpop.permute.xlu0 %786 }
  0xcd   : > { %1322 = vrot.lane.b32.xlu1 %v1281_v26, %s3096_s21  ;;  %v3912_v2 = vsel %vm1385_vm9, %v1362_v24, %v787_v5 }
  0xce   : > { %1312 = vrot.lane.b32.xlu0 %v1271_v35, %s3096_s21  ;;  %v4982_v35 = vld [vmem:[#allocation25_spill] sm:$0xff] }
  0xcf   : > { %v793_v29 = vpop.permute.xlu1 %792 }
  0xd0   : > { %v3919_v60 = vsel %vm1385_vm9, %v1368_v62, %v793_v29  ;;  %v791_v25 = vpop.permute.xlu0 %790  ;;  %v4983_v29 = vld [vmem:[#allocation11_spill] sm:$0xff] }
  0xd1   : > { %836 = vrot.lane.b32.xlu1 %v3623_v27, %s3090_s13  ;;  %v3927_v26 = vsel %vm1385_vm9, %v1366_v16, %v791_v25  ;;  %v1019_v12 = vrot.slane %v4983_v29, 2 }
  0xd2   : > { %826 = vrot.lane.b32.xlu0 %v4982_v35, %s3090_s13  ;;  %v4985_v35 = vld [vmem:[#allocation6_spill] sm:$0xff] }
  0xd3   : > { %v797_v24 = vpop.permute.xlu1 %796 }
  0xd4   : > { %v3935_v5 = vsel %vm1385_vm9, %v1372_v41, %v797_v24  ;;  %v795_v62 = vpop.permute.xlu0 %794  ;;  %v4984_v41 = vld [vmem:[#allocation10_spill] sm:$0xff]  ;;  %v1154_v24 = vrot.slane %v4985_v35, 3 }
  0xd5   : > { %973 = vrot.lane.b32.xlu1 %v3612_v46, %s3093_s15  ;;  %v3943_v27 = vsel %vm1385_vm9, %v1370_v15, %v795_v62  ;;  %v1153_v46 = vrot.slane %v4984_v41, 2  ;;  %v1374_v15 = vsel %vm1342_vm8, %v4983_v29, %v3795_v49 }
  0xd6   : > { %963 = vrot.lane.b32.xlu0 %v3620_v51, %s3093_s15  ;;  %v4986_v51 = vrot.slane %v3286_v61, 2  ;;  %v3065_v61 = vld [vmem:[%s3146_s25] sm:$0xff]  }
  0xd7   : > { %v801_v16 = vpop.permute.xlu1 %800 }
  0xd8   : > { %v3952_v25 = vsel %vm1385_vm9, %v1376_v38, %v801_v16  ;;  %v799_v62 = vpop.permute.xlu0 %798  ;;  %v3969_v38 = vsel %vm991_vm5, %v4986_v51, %v1019_v12  ;;  %v1380_v16 = vsel %vm1342_vm8, %v3344_v58, %v3816_v42  ;;  %v1378_v51 = vsel %vm1342_vm8, %v3321_v31, %v3805_v53 }
  0xd9   : > { %1059 = vrot.lane.b32.xlu1 %v1018_v10, %s3092_s14  ;;  %v3962_v22 = vsel %vm1385_vm9, %v1374_v15, %v799_v62  ;;  %v4987_v10 = vrot.slane %v4977_v20, 2  ;;  %v3985_v62 = vor.u32 %v1154_v24, %v1153_v46  ;;  %v1272_v53 = vrot.slane %v4980_v48, 3 }
  0xda   : > { %1049 = vrot.lane.b32.xlu0 %v1008_v4, %s3092_s14  ;;  %v1282_v4 = vrot.slane %v4983_v29, 3 }
  0xdb   : > { %v805_v49 = vpop.permute.xlu1 %804  ;;  %v3983_v15 = vsel %vm991_vm5, %v4987_v10, %v1009_v1  ;;  %v1156_v31 = vsel %vm1121_vm3, %v3590_v3, %v3985_v62 }
  0xdc   : > { %v3976_v44 = vsel %vm1385_vm9, %v1380_v16, %v805_v49  ;;  %v803_v58 = vpop.permute.xlu0 %802  ;;  %v1384_v16 = vsel %vm1342_vm8, %v3378_v30, %v3825_v34  ;;  %v1382_v49 = vsel %vm1342_vm8, %v3358_v9, %v3814_v23  ;;  %v1283_v34 = vsel %vm1256_vm7, %v1280_v0, %v1282_v4 }
  0xdd   : > { %1103 = vrot.lane.b32.xlu1 %v3969_v38, %s3095_s17  ;;  %v3993_v42 = vsel %vm1385_vm9, %v1378_v51, %v803_v58  ;;  %v4988_v9 = vrot.slane %v4977_v20, 3  ;;  %v891_v51 = vrot.slane %v4985_v35, 2  ;;  %v1344_v0 = vsel %vm1342_vm8, %v3065_v61, %v3741_v14  ;;  %v4991_v61 = vld [vmem:[#allocation8_spill] sm:$0xff] }
  0xde   : > { %1093 = vrot.lane.b32.xlu0 %v3983_v15, %s3095_s17  ;;  %v1387_v20 = vsel %vm1385_vm9, %v1344_v0, %v3823_v33  ;;  %v1157_v0 = vrot.slane %v4991_v61, 2 }
  0xdf   : > { %v809_v46 = vpop.permute.xlu1 %808  ;;  %v1273_v23 = vsel %vm1256_vm7, %v4988_v9, %v1272_v53  ;;  %v4989_v9 = vld [vmem:[#allocation18_spill] sm:$0xff] }
  0xe0   : > { %v4002_v24 = vsel %vm1385_vm9, %v1384_v16, %v809_v46  ;;  %v807_v10 = vpop.permute.xlu0 %806 }
  0xe1   : > { %1238 = vrot.lane.b32.xlu1 %v3637_v52, %s3094_s16  ;;  %v4014_v30 = vsel %vm1385_vm9, %v1382_v49, %v807_v10  ;;  %v890_v52 = vrot.slane %v4984_v41, 1 }
  0xe2   : > { %1228 = vrot.lane.b32.xlu0 %v1156_v31, %s3094_s16 }
  0xe3   : > { %v815_v3 = vpop.permute.xlu1 %814  ;;  %v4036_v46 = vor.u32 %v891_v51, %v890_v52  ;;  %v3097_v51 = vmov 0  }
  0xe4   : > { %v813_v58 = vpop.permute.xlu0 %812  ;;  %3037 = vset.pattern.permute.xlu1 %v3097_v51  ;;  %3036 = vset.pattern.permute.xlu0 %v3097_v51 }
  0xe5   : > { %1324 = vrot.lane.b32.xlu1 %v1283_v34, %s3096_s21  ;;  %v1430_v41 = vsel %vm1428_vm10, %v1387_v20, %v813_v58  ;;  %v893_v33 = vsel %vm854_vm2, %v3605_v45, %v4036_v46  ;;  %v1021_v34 = vrot.slane %v3315_v28, 2  ;;  %v4056_v58 = vld [vmem:[%s3146_s25 + $0x58] sm:$0xff]  }
  0xe6   : > { %1314 = vrot.lane.b32.xlu0 %v1273_v23, %s3096_s21  ;;  %v4990_v23 = vld [vmem:[#allocation13_spill] sm:$0xff] }
  0xe7   : > { %v1036_v16 = vpop.permute.xlu1 %1035  ;;  %v1178_v52 = vrot.slane %v4990_v23, 3 }
  0xe8   : > { %v950_v35 = vpop.permute.xlu0 %949 }
  0xe9   : > { %838 = vrot.lane.b32.xlu1 %v3608_v47, %s3090_s13  ;;  %v1473_v31 = vsel %vm1471_vm11, %v1430_v41, %v950_v35 }
  0xea   : > { %828 = vrot.lane.b32.xlu0 %v3567_v18, %s3090_s13  ;;  %v1516_v49 = vsel %vm1514_vm12, %v1473_v31, %v1036_v16  ;;  %v1177_v18 = vrot.slane %v4989_v9, 2  ;;  %v4992_v16 = vld [vmem:[#allocation7_spill] sm:$0xff] }
  0xeb   : > { %v1215_v14 = vpop.permute.xlu1 %1214  ;;  %v1158_v20 = vrot.slane %v4992_v16, 3  ;;  %v3067_v31 = vld [vmem:[%s3146_s25 + $0x8] sm:$0xff]  }
  0xec   : > { %v1080_v10 = vpop.permute.xlu0 %1079  ;;  %v4075_v51 = vor.u32 %v1178_v52, %v1177_v18  ;;  %v4993_v18 = vmov 0.0  }
  0xed   : > { %975 = vrot.lane.b32.xlu1 %v3692_v40, %s3093_s15  ;;  %v1559_v47 = vsel %vm1557_vm13, %v1516_v49, %v1080_v10  ;;  %v1011_v40 = vrot.slane %v4056_v58, 2  ;;  %v4073_v10 = vsel %vm991_vm5, %v1019_v12, %v1021_v34 }
  0xee   : > { %965 = vrot.lane.b32.xlu0 %v893_v33, %s3093_s15  ;;  %v1602_v41 = vsel %vm1600_vm14, %v1559_v47, %v1215_v14  ;;  %v1346_v33 = vsel %vm1342_vm8, %v3067_v31, %v3749_v63  ;;  %v4090_v47 = vor.u32 %v1158_v20, %v1157_v0  ;;  %v1180_v52 = vsel %vm1121_vm3, %v3625_v8, %v4075_v51 }
  0xef   : > { %v952_v45 = vpop.permute.xlu1 %951  ;;  %v1389_v14 = vsel %vm1385_vm9, %v1346_v33, %v3838_v39  ;;  %v4088_v12 = vsel %vm991_vm5, %v1009_v1, %v1011_v40  ;;  %v1274_v20 = vrot.slane %v4056_v58, 3 }
  0xf0   : > { %v1301_v35 = vpop.permute.xlu0 %1300 }
  0xf1   : > { %1061 = vrot.lane.b32.xlu1 %v3969_v38, %s3092_s14  ;;  %v1645_v49 = vsel %vm1643_vm15, %v1602_v41, %v1301_v35  ;;  %v1432_v38 = vsel %vm1428_vm10, %v1389_v14, %v815_v3  ;;  %v4102_v41 = vld [vmem:[%s3146_s25 + $0x80] sm:$0xff]   ;;  %v915_v14 = vrot.slane %v4990_v23, 2  ;;  %v1275_v29 = vsel %vm1256_vm7, %v1272_v53, %v1274_v20 }
  0xf2   : > { %1051 = vrot.lane.b32.xlu0 %v3983_v15, %s3092_s14  ;;  %2927 = vmatmul.mubr.msk.bf16.vlgmr.msra.gmra.mrb[0].mxu0 %vm1706_vm0, %v1645_v49  ;;  %v1475_v39 = vsel %vm1471_vm11, %v1432_v38, %v952_v45  ;;  %v1284_v1 = vrot.slane %v4102_v41, 3  ;;  %v1160_v45 = vsel %vm1121_vm3, %v3985_v62, %v4090_v47  ;;  %v914_v49 = vrot.slane %v4989_v9, 1  ;;  %v3069_v38 = vld [vmem:[%s3146_s25 + $0x10] sm:$0xff]  }
  0xf3   : > { %v1082_v63 = vpop.permute.xlu1 %1081  ;;  %2930 = vmatprep.mubr.msk.bf16.mxu0 %vm3091_vm6, %v4993_v18  ;;  %v895_v9 = vrot.slane %v4992_v16, 2 }
  0xf4   : > { %v1038_v15 = vpop.permute.xlu0 %1037  ;;  %v1285_v33 = vsel %vm1256_vm7, %v1282_v4, %v1284_v1  ;;  %v894_v4 = vrot.slane %v4991_v61, 1 }
  0xf5   : > { %1105 = vrot.lane.b32.xlu1 %v4073_v10, %s3095_s17  ;;  %v1518_v3 = vsel %vm1514_vm12, %v1475_v39, %v1038_v15  ;;  %v1348_v39 = vsel %vm1342_vm8, %v3069_v38, %v3739_v50 }
  0xf6   : > { %1095 = vrot.lane.b32.xlu0 %v4088_v12, %s3095_s17  ;;  %v1561_v35 = vsel %vm1557_vm13, %v1518_v3, %v1082_v63  ;;  %v1391_v23 = vsel %vm1385_vm9, %v1348_v39, %v3836_v43  ;;  %v4140_v3 = vor.u32 %v915_v14, %v914_v49  ;;  %v4143_v53 = vor.u32 %v895_v9, %v894_v4  ;;  %v3071_v39 = vld [vmem:[%s3146_s25 + $0x18] sm:$0xff]  }
  0xf7   : > { %v1303_v0 = vpop.permute.xlu1 %1302  ;;  %v1161_v4 = vrot.slane %v4972_v54, 2  ;;  %v1162_v9 = vrot.slane %v4973_v32, 3  ;;  %v4997_v32 = vrot.slane %v3267_v55, 2 }
  0xf8   : > { %v1217_v31 = vpop.permute.xlu0 %1216 }
  0xf9   : > { %1240 = vrot.lane.b32.xlu1 %v1180_v52, %s3094_s16  ;;  %v1604_v8 = vsel %vm1600_vm14, %v1561_v35, %v1217_v31  ;;  %v917_v52 = vsel %vm854_vm2, %v3680_v36, %v4140_v3  ;;  %v897_v35 = vsel %vm854_vm2, %v4036_v46, %v4143_v53  ;;  %v4995_v36 = vld [vmem:[#allocation15_spill] sm:$0xff] }
  0xfa   : > { %1230 = vrot.lane.b32.xlu0 %v1160_v45, %s3094_s16  ;;  %v1647_v62 = vsel %vm1643_vm15, %v1604_v8, %v1303_v0  ;;  %v4994_v0 = vld [vmem:[#allocation26_spill] sm:$0xff]  ;;  %v1181_v14 = vrot.slane %v4995_v36, 2 }
  0xfb   : > { %v954_v63 = vpop.permute.xlu1 %953  ;;  %2931 = vmatmul.mubr.msk.bf16.gmra.mrb[4].mxu0 %vm1706_vm0, %v1647_v62  ;;  %v4996_v62 = vld [vmem:[#allocation14_spill] sm:$0xff] }
  0xfc   : > { %v817_v15 = vpop.permute.xlu0 %816  ;;  %2934 = vmatprep.mubr.msk.bf16.mxu0 %vm3091_vm6, %v4993_v18 }
  0xfd   : > { %1326 = vrot.lane.b32.xlu1 %v1285_v33, %s3096_s21  ;;  %v1434_v50 = vsel %vm1428_vm10, %v1391_v23, %v817_v15  ;;  %v4161_v33 = vld [vmem:[%s3146_s25 + $0x88] sm:$0xff]  }
  0xfe   : > { %1316 = vrot.lane.b32.xlu0 %v1275_v29, %s3096_s21  ;;  %v1477_v61 = vsel %vm1471_vm11, %v1434_v50, %v954_v63  ;;  %v1023_v49 = vrot.slane %v4161_v33, 2  ;;  %v1182_v63 = vrot.slane %v4996_v62, 3  ;;  %v1350_v29 = vsel %vm1342_vm8, %v3071_v39, %v3747_v13 }
  0xff   : > { %v1084_v48 = vpop.permute.xlu1 %1083  ;;  %v1393_v23 = vsel %vm1385_vm9, %v1350_v29, %v3852_v6  ;;  %v1286_v55 = vrot.slane %v4161_v33, 3 }
 0x100   : > { %v1040_v16 = vpop.permute.xlu0 %1039  ;;  %v4186_v13 = vsel %vm991_vm5, %v1021_v34, %v1023_v49  ;;  %v4188_v54 = vor.u32 %v1182_v63, %v1181_v14  ;;  %v3073_v14 = vld [vmem:[%s3146_s25 + $0x20] sm:$0xff]  }
 0x101   : > { %840 = vrot.lane.b32.xlu1 %v3642_v17, %s3090_s13  ;;  %v1520_v43 = vsel %vm1514_vm12, %v1477_v61, %v1040_v16  ;;  %v1352_v63 = vsel %vm1342_vm8, %v3073_v14, %v3759_v11 }
 0x102   : > { %830 = vrot.lane.b32.xlu0 %v4994_v0, %s3090_s13  ;;  %v1563_v31 = vsel %vm1557_vm13, %v1520_v43, %v1084_v48  ;;  %v4199_v48 = vor.u32 %v1162_v9, %v1161_v4  ;;  %v4215_v43 = vld [vmem:[%s3146_s25 + $0x60] sm:$0xff]   ;;  %v5000_v9 = vld [vmem:[#allocation28_spill] sm:$0xff] }
 0x103   : > { %v1305_v45 = vpop.permute.xlu1 %1304 }
 0x104   : > { %v1219_v8 = vpop.permute.xlu0 %1218  ;;  %v1164_v16 = vsel %vm1121_vm3, %v4090_v47, %v4199_v48  ;;  %v919_v47 = vrot.slane %v4996_v62, 2 }
 0x105   : > { %977 = vrot.lane.b32.xlu1 %v917_v52, %s3093_s15  ;;  %v1606_v17 = vsel %vm1600_vm14, %v1563_v31, %v1219_v8  ;;  %v1276_v52 = vrot.slane %v4215_v43, 3  ;;  %v918_v31 = vrot.slane %v4995_v36, 1 }
 0x106   : > { %967 = vrot.lane.b32.xlu0 %v897_v35, %s3093_s15  ;;  %v1649_v38 = vsel %vm1643_vm15, %v1606_v17, %v1305_v45  ;;  %v1287_v35 = vsel %vm1256_vm7, %v1284_v1, %v1286_v55  ;;  %v4998_v1 = vld [vmem:[#allocation34_spill] sm:$0xff] }
 0x107   : > { %v956_v46 = vpop.permute.xlu1 %955  ;;  %2935 = vmatmul.mubr.msk.bf16.gmra.mrb[8].mxu0 %vm1706_vm0, %v1649_v38  ;;  %v1277_v41 = vsel %vm1256_vm7, %v1274_v20, %v1276_v52  ;;  %v1395_v36 = vsel %vm1385_vm9, %v1352_v63, %v4998_v1  ;;  %v920_v11 = vor.u32 %v919_v47, %v918_v31  ;;  %v4999_v20 = vld [vmem:[#allocation29_spill] sm:$0xff] }
 0x108   : > { %v819_v15 = vpop.permute.xlu0 %818  ;;  %2938 = vmatprep.mubr.msk.bf16.mxu0 %vm3091_vm6, %v4993_v18 }
 0x109   : > { %1063 = vrot.lane.b32.xlu1 %v4073_v10, %s3092_s14  ;;  %v1436_v50 = vsel %vm1428_vm10, %v1393_v23, %v819_v15  ;;  %v4197_v10 = vsel %vm991_vm5, %v1011_v40, %v4997_v32  ;;  %v921_v4 = vsel %vm854_vm2, %v4140_v3, %v920_v11  ;;  %v5001_v15 = vld [vmem:[#allocation12_spill] sm:$0xff] }
 0x10a   : > { %1053 = vrot.lane.b32.xlu0 %v4088_v12, %s3092_s14  ;;  %v1479_v28 = vsel %vm1471_vm11, %v1436_v50, %v956_v46  ;;  %v1184_v12 = vsel %vm1121_vm3, %v4075_v51, %v4188_v54  ;;  %v901_v50 = vsel %vm854_vm2, %v4143_v53, %v5001_v15  ;;  %v3074_v3 = vld [vmem:[%s3146_s25 + $0x90] sm:$0xff]   ;;  %v5004_v53 = vld [vmem:[#allocation2_spill] sm:$0xff] }
 0x10b   : > { %v1086_v6 = vpop.permute.xlu1 %1085 }
 0x10c   : > { %v1042_v61 = vpop.permute.xlu0 %1041 }
 0x10d   : > { %1107 = vrot.lane.b32.xlu1 %v4186_v13, %s3095_s17  ;;  %v1522_v34 = vsel %vm1514_vm12, %v1479_v28, %v1042_v61  ;;  %v5002_v28 = vld [vmem:[#allocation21_spill] sm:$0xff] }
 0x10e   : > { %1097 = vrot.lane.b32.xlu0 %v4197_v10, %s3095_s17  ;;  %v1565_v0 = vsel %vm1557_vm13, %v1522_v34, %v1086_v6  ;;  %v1185_v61 = vrot.slane %v5002_v28, 2  ;;  %v5003_v34 = vld [vmem:[#allocation16_spill] sm:$0xff] }
 0x10f   : > { %v1307_v40 = vpop.permute.xlu1 %1306 }
 0x110   : > { %v1221_v45 = vpop.permute.xlu0 %1220 }
 0x111   : > { %1242 = vrot.lane.b32.xlu1 %v1184_v12, %s3094_s16  ;;  %v1608_v51 = vsel %vm1600_vm14, %v1565_v0, %v1221_v45  ;;  %v1186_v12 = vrot.slane %v5003_v34, 3 }
 0x112   : > { %1232 = vrot.lane.b32.xlu0 %v1164_v16, %s3094_s16  ;;  %v1651_v8 = vsel %vm1643_vm15, %v1608_v51, %v1307_v40  ;;  %v1025_v16 = vrot.slane %v3074_v3, 2  ;;  %v3075_v51 = vld [vmem:[%s3146_s25 + $0x28] sm:$0xff]  }
 0x113   : > { %v958_v17 = vpop.permute.xlu1 %957  ;;  %2939 = vmatmul.mubr.msk.bf16.gmra.mrb[12].mxu0 %vm1706_vm0, %v1651_v8  ;;  %v1187_v8 = vor.u32 %v1186_v12, %v1185_v61  ;;  %v5009_v12 = vld [vmem:[#allocation31_spill] sm:$0xff] }
 0x114   : > { %v821_v62 = vpop.permute.xlu0 %820  ;;  %2942 = vmatprep.mubr.msk.bf16.mxu0 %vm3091_vm6, %v4993_v18  ;;  %v1026_v14 = vsel %vm991_vm5, %v1023_v49, %v1025_v16  ;;  %v5005_v49 = vld [vmem:[#allocation9_spill] sm:$0xff] }
 0x115   : > { %1328 = vrot.lane.b32.xlu1 %v1287_v35, %s3096_s21  ;;  %v1438_v38 = vsel %vm1428_vm10, %v1395_v36, %v821_v62  ;;  %v1354_v35 = vsel %vm1342_vm8, %v3075_v51, %v5004_v53  ;;  %v1288_v36 = vrot.slane %v3074_v3, 3  ;;  %v922_v62 = vrot.slane %v5002_v28, 1 }
 0x116   : > { %1318 = vrot.lane.b32.xlu0 %v1277_v41, %s3096_s21  ;;  %v1481_v58 = vsel %vm1471_vm11, %v1438_v38, %v958_v17  ;;  %v1397_v31 = vsel %vm1385_vm9, %v1354_v35, %v3868_v37  ;;  %v923_v38 = vrot.slane %v5003_v34, 2 }
 0x117   : > { %v1088_v46 = vpop.permute.xlu1 %1087 }
 0x118   : > { %v1044_v39 = vpop.permute.xlu0 %1043 }
 0x119   : > { %842 = vrot.lane.b32.xlu1 %v4999_v20, %s3090_s13  ;;  %v1524_v29 = vsel %vm1514_vm12, %v1481_v58, %v1044_v39  ;;  %v1289_v20 = vsel %vm1256_vm7, %v1286_v55, %v1288_v36  ;;  %v3076_v55 = vld [vmem:[%s3146_s25 + $0x98] sm:$0xff]  }
 0x11a   : > { %832 = vrot.lane.b32.xlu0 %v5000_v9, %s3090_s13  ;;  %v1567_v6 = vsel %vm1557_vm13, %v1524_v29, %v1088_v46  ;;  %v1168_v46 = vsel %vm1121_vm3, %v4199_v48, %v4978_v19  ;;  %v924_v29 = vor.u32 %v923_v38, %v922_v62  ;;  %v5006_v19 = vrot.slane %v3273_v57, 3  ;;  %v5008_v57 = vld [vmem:[#allocation17_spill] sm:$0xff] }
 0x11b   : > { %v1309_v23 = vpop.permute.xlu1 %1308  ;;  %v1027_v15 = vrot.slane %v3076_v55, 2  ;;  %v1190_v28 = vrot.slane %v5008_v57, 3  ;;  %v1290_v61 = vrot.slane %v3076_v55, 3 }
 0x11c   : > { %v1223_v32 = vpop.permute.xlu0 %1222  ;;  %v1279_v48 = vsel %vm1256_vm7, %v1276_v52, %v5006_v19  ;;  %v925_v33 = vsel %vm854_vm2, %v920_v11, %v924_v29  ;;  %v927_v11 = vrot.slane %v5008_v57, 2 }
 0x11d   : > { %979 = vrot.lane.b32.xlu1 %v921_v4, %s3093_s15  ;;  %v1610_v40 = vsel %vm1600_vm14, %v1567_v6, %v1223_v32  ;;  %v5007_v6 = vld [vmem:[#allocation19_spill] sm:$0xff]  ;;  %v1028_v52 = vsel %vm991_vm5, %v1025_v16, %v1027_v15 }
 0x11e   : > { %969 = vrot.lane.b32.xlu0 %v901_v50, %s3093_s15  ;;  %v1653_v0 = vsel %vm1643_vm15, %v1610_v40, %v1309_v23  ;;  %v1189_v32 = vrot.slane %v5007_v6, 2  ;;  %v926_v34 = vrot.slane %v5007_v6, 1 }
 0x11f   : > { %v960_v45 = vpop.permute.xlu1 %959  ;;  %2943 = vmatmul.mubr.msk.bf16.gmra.mrb[16].mxu0 %vm1706_vm0, %v1653_v0 }
 0x120   : > { %v823_v47 = vpop.permute.xlu0 %822  ;;  %2946 = vmatprep.mubr.msk.bf16.mxu0 %vm3091_vm6, %v4993_v18  ;;  %v1191_v3 = vor.u32 %v1190_v28, %v1189_v32  ;;  %v928_v51 = vor.u32 %v927_v11, %v926_v34  ;;  %v4364_v32 = vld [vmem:[%s3352_s30] sm:$0xff]   ;;  %v5013_v11 = vld [vmem:[#allocation24_spill] sm:$0xff] }
 0x121   : > { %1065 = vrot.lane.b32.xlu1 %v4186_v13, %s3092_s14  ;;  %v1440_v17 = vsel %vm1428_vm10, %v1397_v31, %v823_v47  ;;  %v1188_v13 = vsel %vm1121_vm3, %v4188_v54, %v1187_v8  ;;  %v4327_v31 = vld [vmem:[%s3146_s25 + $0xa0] sm:$0xff]   ;;  %v934_v57 = vshrl.u32 %v4364_v32, 16  ;;  %s4444_s25 = scalar_lea.vmem %s4868_s2, %s2759_s22 }
 0x122   : > { %1055 = vrot.lane.b32.xlu0 %v4197_v10, %s3092_s14  ;;  %v1483_v37 = vsel %vm1471_vm11, %v1440_v17, %v960_v45  ;;  %v1291_v45 = vsel %vm1256_vm7, %v1288_v36, %v1290_v61  ;;  %v1192_v53 = vsel %vm1121_vm3, %v1187_v8, %v1191_v3  ;;  %v1029_v47 = vrot.slane %v4327_v31, 2  ;;  %v5011_v8 = vld [vmem:[#allocation20_spill] sm:$0xff] }
 0x123   : > { %v1090_v63 = vpop.permute.xlu1 %1089  ;;  %v929_v17 = vsel %vm854_vm2, %v924_v29, %v928_v51  ;;  %v1197_v34 = vrot.slane %v934_v57, 2 }
 0x124   : > { %v1046_v41 = vpop.permute.xlu0 %1045 }
 0x125   : > { %1109 = vrot.lane.b32.xlu1 %v1026_v14, %s3095_s17  ;;  %v1526_v1 = vsel %vm1514_vm12, %v1483_v37, %v1046_v41  ;;  %v5010_v41 = vld [vmem:[#allocation23_spill] sm:$0xff] }
 0x126   : > { %1099 = vrot.lane.b32.xlu0 %v5005_v49, %s3095_s17  ;;  %v1569_v58 = vsel %vm1557_vm13, %v1526_v1, %v1090_v63  ;;  %v1194_v1 = vrot.slane %v5011_v8, 3  ;;  %v1030_v49 = vsel %vm991_vm5, %v1027_v15, %v1029_v47 }
 0x127   : > { %v1311_v10 = vpop.permute.xlu1 %1310 }
 0x128   : > { %v1225_v39 = vpop.permute.xlu0 %1224 }
 0x129   : > { %1244 = vrot.lane.b32.xlu1 %v1188_v13, %s3094_s16  ;;  %v1612_v54 = vsel %vm1600_vm14, %v1569_v58, %v1225_v39  ;;  %v1193_v13 = vrot.slane %v5010_v41, 2  ;;  %v930_v58 = vrot.slane %v5010_v41, 1  ;;  %v931_v39 = vrot.slane %v5011_v8, 2 }
 0x12a   : > { %1234 = vrot.lane.b32.xlu0 %v1168_v46, %s3094_s16  ;;  %v1655_v4 = vsel %vm1643_vm15, %v1612_v54, %v1311_v10 }
 0x12b   : > { %v835_v9 = vpop.permute.xlu1 %834  ;;  %2947 = vmatmul.mubr.msk.bf16.gmra.mrb[20].mxu0 %vm1706_vm0, %v1655_v4  ;;  %v1195_v19 = vor.u32 %v1194_v1, %v1193_v13  ;;  %v932_v15 = vor.u32 %v931_v39, %v930_v58 }
 0x12c   : > { %v825_v23 = vpop.permute.xlu0 %824  ;;  %2950 = vmatprep.mubr.msk.bf16.mxu0 %vm3091_vm6, %v4993_v18  ;;  %v1452_v63 = vsel %vm1428_vm10, %v3927_v26, %v835_v9  ;;  %v1292_v26 = vrot.slane %v4327_v31, 3  ;;  %v4381_v31 = vld [vmem:[%s3352_s30 + $0x8] sm:$0xff]  }
 0x12d   : > { %1330 = vrot.lane.b32.xlu1 %v1289_v20, %s3096_s21  ;;  %v1442_v36 = vsel %vm1428_vm10, %v3863_v59, %v825_v23  ;;  %v5012_v20 = vld [vmem:[#allocation30_spill] sm:$0xff]  ;;  %v1196_v6 = vsel %vm1121_vm3, %v1191_v3, %v1195_v19  ;;  %v941_v41 = vshrl.u32 %v4381_v31, 16  ;;  %v944_v13 = vshll.u32 %v4381_v31, 16 }
 0x12e   : > { %1320 = vrot.lane.b32.xlu0 %v1279_v48, %s3096_s21  ;;  %v1293_v55 = vsel %vm1256_vm7, %v1290_v61, %v1292_v26  ;;  %v1033_v1 = vrot.slane %v4381_v31, 2 }
 0x12f   : > { %v972_v50 = vpop.permute.xlu1 %971 }
 0x130   : > { %v962_v43 = vpop.permute.xlu0 %961 }
 0x131   : > { %981 = vrot.lane.b32.xlu1 %v925_v33, %s3093_s15  ;;  %v1485_v10 = vsel %vm1471_vm11, %v1442_v36, %v962_v43  ;;  %v933_v43 = vsel %vm854_vm2, %v928_v51, %v932_v15  ;;  %v5014_v51 = vld [vmem:[#allocation33_spill] sm:$0xff] }
 0x132   : > { %844 = vrot.lane.b32.xlu0 %v5009_v12, %s3090_s13  ;;  %v1198_v12 = vrot.slane %v5013_v11, 3 }
 0x133   : > { %v1058_v40 = vpop.permute.xlu1 %1057 }
 0x134   : > { %v1048_v0 = vpop.permute.xlu0 %1047 }
 0x135   : > { %1111 = vrot.lane.b32.xlu1 %v1028_v52, %s3095_s17  ;;  %v1528_v54 = vsel %vm1514_vm12, %v1485_v10, %v1048_v0  ;;  %v1294_v0 = vrot.slane %v4364_v32, 3  ;;  %v1202_v10 = vrot.slane %v944_v13, 3 }
 0x136   : > { %1067 = vrot.lane.b32.xlu0 %v1026_v14, %s3092_s14  ;;  %v1495_v14 = vsel %vm1471_vm11, %v1452_v63, %v972_v50 }
 0x137   : > { %v1102_v16 = vpop.permute.xlu1 %1101  ;;  %v1538_v62 = vsel %vm1514_vm12, %v1495_v14, %v1058_v40  ;;  %v1295_v63 = vsel %vm1256_vm7, %v1292_v26, %v1294_v0  ;;  %v1201_v26 = vrot.slane %v941_v41, 2 }
 0x138   : > { %v1092_v35 = vpop.permute.xlu0 %1091  ;;  %v1581_v46 = vsel %vm1557_vm13, %v1538_v62, %v1102_v16  ;;  %v937_v16 = vrot.slane %v5013_v11, 2 }
 0x139   : > { %1332 = vrot.lane.b32.xlu1 %v1291_v45, %s3096_s21  ;;  %v1571_v4 = vsel %vm1557_vm13, %v1528_v54, %v1092_v35  ;;  %v936_v45 = vrot.slane %v934_v57, 1  ;;  %v1199_v35 = vor.u32 %v1198_v12, %v1197_v34 }
 0x13a   : > { %1246 = vrot.lane.b32.xlu0 %v1192_v53, %s3094_s16 }
 0x13b   : > { %v1237_v37 = vpop.permute.xlu1 %1236  ;;  %v1200_v14 = vsel %vm1121_vm3, %v1195_v19, %v1199_v35  ;;  %v5015_v19 = vld [vmem:[#allocation32_spill] sm:$0xff] }
 0x13c   : > { %v1227_v38 = vpop.permute.xlu0 %1226  ;;  %v1624_v59 = vsel %vm1600_vm14, %v1581_v46, %v1237_v37  ;;  %v938_v37 = vor.u32 %v937_v16, %v936_v45  ;;  %v5016_v45 = vld [vmem:[#allocation22_spill] sm:$0xff] }
 0x13d   : > { %983 = vrot.lane.b32.xlu1 %v929_v17, %s3093_s15  ;;  %v1614_v48 = vsel %vm1600_vm14, %v1571_v4, %v1227_v38  ;;  %v946_v4 = vrot.slane %v944_v13, 2  ;;  %v5017_v16 = vrot.slane %v5016_v45, 1 }
 0x13e   : > { %846 = vrot.lane.b32.xlu0 %v5012_v20, %s3090_s13  ;;  %v939_v36 = vsel %vm854_vm2, %v932_v15, %v938_v37  ;;  %v3064_v15 = vld [vmem:[%s3352_s30 + $0x10] ss:$0 sps:$4 sm:$0x77]  }
 0x13f   : > { %v1323_v29 = vpop.permute.xlu1 %1322  ;;  %v1206_v34 = vshrl.u32 %v3064_v15, 16  ;;  %v1209_v11 = vshll.u32 %v3064_v15, 16 }
 0x140   : > { %v1667_v9 = vsel %vm1643_vm15, %v1624_v59, %v1323_v29  ;;  %v1313_v23 = vpop.permute.xlu0 %1312  ;;  %v943_v29 = vrot.slane %v941_v41, 1 }
 0x141   : > { %1113 = vrot.lane.b32.xlu1 %v1030_v49, %s3095_s17  ;;  %2971 = vmatmul.mubr.msk.bf16.vlgmr.msra.gmra.mrb[0].mxu1 %vm1706_vm0, %v1667_v9  ;;  %v1657_v33 = vsel %vm1643_vm15, %v1614_v48, %v1313_v23 }
 0x142   : > { %2974 = vmatprep.mubr.msk.bf16.mxu1 %vm3091_vm6, %v4993_v18  ;;  %1069 = vrot.lane.b32.xlu0 %v1028_v52, %s3092_s14  ;;  %v1031_v52 = vrot.slane %v4364_v32, 2 }
 0x143   : > { %2951 = vmatmul.mubr.msk.bf16.gmra.mrb[24].mxu0 %vm1706_vm0, %v1657_v33  ;;  %v837_v50 = vpop.permute.xlu1 %836 }
 0x144   : > { %2954 = vmatprep.mubr.msk.bf16.mxu0 %vm3091_vm6, %v4993_v18  ;;  %v827_v28 = vpop.permute.xlu0 %826  ;;  %v1032_v3 = vsel %vm991_vm5, %v1029_v47, %v1031_v52  ;;  %v1454_v62 = vsel %vm1428_vm10, %v3919_v60, %v837_v50  ;;  %v1034_v54 = vsel %vm991_vm5, %v1031_v52, %v1033_v1  ;;  %v1296_v60 = vrot.slane %v4381_v31, 3 }
 0x145   : > { %1334 = vrot.lane.b32.xlu1 %v1293_v55, %s3096_s21  ;;  %v1444_v46 = vsel %vm1428_vm10, %v3889_v21, %v827_v28  ;;  %v1203_v55 = vor.u32 %v1202_v10, %v1201_v26  ;;  %v947_v28 = vor.u32 %v946_v4, %v943_v29  ;;  %v467_v26 = vld [vmem:[%s4444_s25] sm:$0xff]  ;;  %v470_v4 = vld [vmem:[%s4444_s25 + $0x18] sm:$0xff] }
 0x146   : > { %1248 = vrot.lane.b32.xlu0 %v1196_v6, %s3094_s16  ;;  %v1297_v57 = vsel %vm1256_vm7, %v1294_v0, %v1296_v60 }
 0x147   : > { %v974_v61 = vpop.permute.xlu1 %973  ;;  %v1204_v52 = vsel %vm1121_vm3, %v1199_v35, %v1203_v55  ;;  %v1211_v35 = vrot.slane %v1209_v11, 3  ;;  %v478_v11 = vld [vmem:[%s4444_s25 + $0x58] sm:$0xff] }
 0x148   : > { %v964_v40 = vpop.permute.xlu0 %963 }
 0x149   : > { %985 = vrot.lane.b32.xlu1 %v933_v43, %s3093_s15  ;;  %v1487_v59 = vsel %vm1471_vm11, %v1444_v46, %v964_v40  ;;  %v948_v40 = vsel %vm854_vm2, %v938_v37, %v947_v28  ;;  %vm2637_vm2 = vcmask 1040384  }
 0x14a   : > { %848 = vrot.lane.b32.xlu0 %v5014_v51, %s3090_s13 }
 0x14b   : > { %v1060_v53 = vpop.permute.xlu1 %1059 }
 0x14c   : > { %v1050_v17 = vpop.permute.xlu0 %1049 }
 0x14d   : > { %1115 = vrot.lane.b32.xlu1 %v1032_v3, %s3095_s17  ;;  %v1530_v9 = vsel %vm1514_vm12, %v1487_v59, %v1050_v17 }
 0x14e   : > { %1071 = vrot.lane.b32.xlu0 %v1030_v49, %s3092_s14  ;;  %v1497_v49 = vsel %vm1471_vm11, %v1454_v62, %v974_v61  ;;  %v810_v61 = vrot.slane %v4381_v31, 1 }
 0x14f   : > { %v1104_v47 = vpop.permute.xlu1 %1103  ;;  %v1540_v58 = vsel %vm1514_vm12, %v1497_v49, %v1060_v53  ;;  %v1208_v53 = vrot.slane %v1206_v34, 2 }
 0x150   : > { %v1094_v8 = vpop.permute.xlu0 %1093  ;;  %v1583_v20 = vsel %vm1557_vm13, %v1540_v58, %v1104_v47  ;;  %v811_v51 = vsel %vm724_vm1, %v5017_v16, %v810_v61  ;;  %v477_v61 = vld [vmem:[%s4444_s25 + $0x50] sm:$0xff]  ;;  %v480_v16 = vld [vmem:[%s4444_s25 + $0x68] sm:$0xff]  ;;  %vm2374_vm1 = vcmask 257024  }
 0x151   : > { %1336 = vrot.lane.b32.xlu1 %v1295_v63, %s3096_s21  ;;  %v1573_v23 = vsel %vm1557_vm13, %v1530_v9, %v1094_v8  ;;  %v1298_v63 = vrot.slane %v3064_v15, 3  ;;  %v1212_v47 = vor.u32 %v1211_v35, %v1208_v53 }
 0x152   : > { %1250 = vrot.lane.b32.xlu0 %v1200_v14, %s3094_s16 }
 0x153   : > { %v1239_v38 = vpop.permute.xlu1 %1238  ;;  %v1299_v41 = vsel %vm1256_vm7, %v1296_v60, %v1298_v63  ;;  %v1213_v8 = vsel %vm1121_vm3, %v1203_v55, %v1212_v47  ;;  %v481_v63 = vld [vmem:[%s4444_s25 + $0x70] sm:$0xff]  ;;  %vm2639_vm3 = vcmask 254976  }
 0x154   : > { %v1229_v39 = vpop.permute.xlu0 %1228  ;;  %v1626_v21 = vsel %vm1600_vm14, %v1583_v20, %v1239_v38 }
 0x155   : > { %987 = vrot.lane.b32.xlu1 %v939_v36, %s3093_s15  ;;  %v1616_v50 = vsel %vm1600_vm14, %v1573_v23, %v1229_v39  ;;  %v468_v36 = vld [vmem:[%s4444_s25 + $0x8] sm:$0xff] }
 0x156   : > { %850 = vrot.lane.b32.xlu0 %v5015_v19, %s3090_s13 }
 0x157   : > { %v1325_v48 = vpop.permute.xlu1 %1324 }
 0x158   : > { %v1669_v33 = vsel %vm1643_vm15, %v1626_v21, %v1325_v48  ;;  %v1315_v6 = vpop.permute.xlu0 %1314  ;;  %v471_v48 = vld [vmem:[%s4444_s25 + $0x20] sm:$0xff] }
 0x159   : > { %1117 = vrot.lane.b32.xlu1 %v1034_v54, %s3095_s17  ;;  %2975 = vmatmul.mubr.msk.bf16.gmra.mrb[4].mxu1 %vm1706_vm0, %v1669_v33  ;;  %v1659_v32 = vsel %vm1643_vm15, %v1616_v50, %v1315_v6  ;;  %v472_v33 = vld [vmem:[%s4444_s25 + $0x28] sm:$0xff]  ;;  %v474_v6 = vld [vmem:[%s4444_s25 + $0x38] sm:$0xff] }
 0x15a   : > { %2978 = vmatprep.mubr.msk.bf16.mxu1 %vm3091_vm6, %v4993_v18  ;;  %1073 = vrot.lane.b32.xlu0 %v1032_v3, %s3092_s14  ;;  %v1077_v3 = vrot.slane %v3064_v15, 2  ;;  %v473_v15 = vld [vmem:[%s4444_s25 + $0x30] sm:$0xff] }
 0x15b   : > { %2955 = vmatmul.mubr.msk.bf16.gmra.mrb[28].mxu0 %vm1706_vm0, %v1659_v32  ;;  %v839_v43 = vpop.permute.xlu1 %838 }
 0x15c   : > { %2958 = vmatprep.mubr.msk.bf16.mxu0 %vm3091_vm6, %v4993_v18  ;;  %v829_v12 = vpop.permute.xlu0 %828  ;;  %v1078_v17 = vsel %vm991_vm5, %v1033_v1, %v1077_v3  ;;  %v1456_v62 = vsel %vm1428_vm10, %v3943_v27, %v839_v43  ;;  %v469_v27 = vld [vmem:[%s4444_s25 + $0x10] sm:$0xff]  ;;  %v476_v43 = vld [vmem:[%s4444_s25 + $0x48] sm:$0xff] }
 0x15d   : > { %1338 = vrot.lane.b32.xlu1 %v1297_v57, %s3096_s21  ;;  %v1446_v10 = vsel %vm1428_vm10, %v3881_v7, %v829_v12  ;;  %v475_v57 = vld [vmem:[%s4444_s25 + $0x40] sm:$0xff] }
 0x15e   : > { %1252 = vrot.lane.b32.xlu0 %v1204_v52, %s3094_s16 }
 0x15f   : > { %v976_v0 = vpop.permute.xlu1 %975 }
 0x160   : > { %v966_v31 = vpop.permute.xlu0 %965  ;;  %v1499_v49 = vsel %vm1471_vm11, %v1456_v62, %v976_v0 }
 0x161   : > { %989 = vrot.lane.b32.xlu1 %v948_v40, %s3093_s15  ;;  %v1489_v39 = vsel %vm1471_vm11, %v1446_v10, %v966_v31  ;;  %v479_v40 = vld [vmem:[%s4444_s25 + $0x60] sm:$0xff] }
 0x162   : > { %852 = vrot.lane.b32.xlu0 %v811_v51, %s3090_s13 }
 0x163   : > { %v1062_v37 = vpop.permute.xlu1 %1061 }
 0x164   : > { %v1052_v14 = vpop.permute.xlu0 %1051  ;;  %v1542_v46 = vsel %vm1514_vm12, %v1499_v49, %v1062_v37 }
 0x165   : > { %1119 = vrot.lane.b32.xlu1 %v1078_v17, %s3095_s17  ;;  %v1532_v60 = vsel %vm1514_vm12, %v1489_v39, %v1052_v14  ;;  %v487_v39 = vld [vmem:[%s4444_s25 + $0xa0] sm:$0xff] }
 0x166   : > { %1075 = vrot.lane.b32.xlu0 %v1034_v54, %s3092_s14 }
 0x167   : > { %v1106_v13 = vpop.permute.xlu1 %1105 }
 0x168   : > { %v1096_v1 = vpop.permute.xlu0 %1095  ;;  %v1585_v54 = vsel %vm1557_vm13, %v1542_v46, %v1106_v13  ;;  %v486_v46 = vld [vmem:[%s4444_s25 + $0x98] sm:$0xff] }
 0x169   : > { %1340 = vrot.lane.b32.xlu1 %v1299_v41, %s3096_s21  ;;  %v1575_v29 = vsel %vm1557_vm13, %v1532_v60, %v1096_v1  ;;  %v482_v41 = vld [vmem:[%s4444_s25 + $0x78] sm:$0xff] }
 0x16a   : > { %1254 = vrot.lane.b32.xlu0 %v1213_v8, %s3094_s16 }
 0x16b   : > { %v1241_v38 = vpop.permute.xlu1 %1240 }
 0x16c   : > { %v1231_v58 = vpop.permute.xlu0 %1230  ;;  %v1628_v59 = vsel %vm1600_vm14, %v1585_v54, %v1241_v38  ;;  %v484_v38 = vld [vmem:[%s4444_s25 + $0x88] sm:$0xff] }
 0x16d   : > { %1961 = vperm.xlu1 %3037, %v468_v36   ;;  %v1618_v9 = vsel %vm1600_vm14, %v1575_v29, %v1231_v58  ;;  %v483_v36 = vld [vmem:[%s4444_s25 + $0x80] sm:$0xff]  ;;  %v490_v29 = vld [vmem:[%s4444_s25 + $0xb8] sm:$0xff] }
 0x16e   : > { %1956 = vperm.xlu0 %3036, %v467_v26   ;;  %v485_v26 = vld [vmem:[%s4444_s25 + $0x90] sm:$0xff] }
 0x16f   : > { %v1327_v20 = vpop.permute.xlu1 %1326 }
 0x170   : > { %v1671_v7 = vsel %vm1643_vm15, %v1628_v59, %v1327_v20  ;;  %v1317_v21 = vpop.permute.xlu0 %1316  ;;  %v489_v59 = vld [vmem:[%s4444_s25 + $0xb0] sm:$0xff] }
 0x171   : > { %1966 = vperm.xlu1 %3037, %v469_v27   ;;  %2979 = vmatmul.mubr.msk.bf16.gmra.mrb[8].mxu1 %vm1706_vm0, %v1671_v7  ;;  %v1661_v19 = vsel %vm1643_vm15, %v1618_v9, %v1317_v21  ;;  %v488_v27 = vld [vmem:[%s4444_s25 + $0xa8] sm:$0xff] }
 0x172   : > { %2982 = vmatprep.mubr.msk.bf16.mxu1 %vm3091_vm6, %v4993_v18  ;;  %1971 = vperm.xlu0 %3036, %v470_v4   ;;  %v491_v4 = vld [vmem:[%s4444_s25 + $0xc0] sm:$0xff] }
 0x173   : > { %2959 = vmatmul.mubr.msk.bf16.gmra.mrb[32].mxu0 %vm1706_vm0, %v1661_v19  ;;  %v841_v23 = vpop.permute.xlu1 %840 }
 0x174   : > { %2962 = vmatprep.mubr.msk.bf16.mxu0 %vm3091_vm6, %v4993_v18  ;;  %v831_v55 = vpop.permute.xlu0 %830  ;;  %v1458_v3 = vsel %vm1428_vm10, %v3935_v5, %v841_v23 }
 0x175   : > { %1976 = vperm.xlu1 %3037, %v471_v48   ;;  %v1448_v51 = vsel %vm1428_vm10, %v3912_v2, %v831_v55  ;;  %v492_v48 = vld [vmem:[%s4444_s25 + $0xc8] sm:$0xff] }
 0x176   : > { %1981 = vperm.xlu0 %3036, %v472_v33  }
 0x177   : > { %v978_v50 = vpop.permute.xlu1 %977 }
 0x178   : > { %v968_v32 = vpop.permute.xlu0 %967  ;;  %v1501_v45 = vsel %vm1471_vm11, %v1458_v3, %v978_v50 }
 0x179   : > { %1986 = vperm.xlu1 %3037, %v473_v15   ;;  %v1491_v31 = vsel %vm1471_vm11, %v1448_v51, %v968_v32  ;;  %v498_v51 = vld [vmem:[%s4444_s25 + $0xf8] sm:$0xff] }
 0x17a   : > { %1991 = vperm.xlu0 %3036, %v474_v6   ;;  %v493_v6 = vld [vmem:[%s4444_s25 + $0xd0] sm:$0xff] }
 0x17b   : > { %v1064_v28 = vpop.permute.xlu1 %1063 }
 0x17c   : > { %v1054_v52 = vpop.permute.xlu0 %1053  ;;  %v1544_v53 = vsel %vm1514_vm12, %v1501_v45, %v1064_v28  ;;  %v497_v45 = vld [vmem:[%s4444_s25 + $0xf0] sm:$0xff] }
 0x17d   : > { %1996 = vperm.xlu1 %3037, %v475_v57   ;;  %v1534_v5 = vsel %vm1514_vm12, %v1491_v31, %v1054_v52 }
 0x17e   : > { %2001 = vperm.xlu0 %3036, %v476_v43   ;;  %v494_v43 = vld [vmem:[%s4444_s25 + $0xd8] sm:$0xff] }
 0x17f   : > { %v1108_v34 = vpop.permute.xlu1 %1107 }
 0x180   : > { %v1098_v12 = vpop.permute.xlu0 %1097  ;;  %v1587_v17 = vsel %vm1557_vm13, %v1544_v53, %v1108_v34 }
 0x181   : > { %2006 = vperm.xlu1 %3037, %v477_v61   ;;  %v1577_v14 = vsel %vm1557_vm13, %v1534_v5, %v1098_v12  ;;  %v500_v5 = vld [vmem:[%s4444_s25 + $0x108] sm:$0xff] }
 0x182   : > { %2011 = vperm.xlu0 %3036, %v478_v11   ;;  %v495_v11 = vld [vmem:[%s4444_s25 + $0xe0] sm:$0xff] }
 0x183   : > { %v1243_v0 = vpop.permute.xlu1 %1242 }
 0x184   : > { %v1233_v35 = vpop.permute.xlu0 %1232  ;;  %v1630_v37 = vsel %vm1600_vm14, %v1587_v17, %v1243_v0  ;;  %v499_v17 = vld [vmem:[%s4444_s25 + $0x100] sm:$0xff] }
 0x185   : > { %2016 = vperm.xlu1 %3037, %v479_v40   ;;  %v1620_v13 = vsel %vm1600_vm14, %v1577_v14, %v1233_v35  ;;  %v496_v40 = vld [vmem:[%s4444_s25 + $0xe8] sm:$0xff]  ;;  %v501_v14 = vld [vmem:[%s4444_s25 + $0x110] sm:$0xff] }
 0x186   : > { %2021 = vperm.xlu0 %3036, %v480_v16  }
 0x187   : > { %v1329_v47 = vpop.permute.xlu1 %1328 }
 0x188   : > { %v1673_v2 = vsel %vm1643_vm15, %v1630_v37, %v1329_v47  ;;  %v1319_v8 = vpop.permute.xlu0 %1318 }
 0x189   : > { %2026 = vperm.xlu1 %3037, %v481_v63   ;;  %2983 = vmatmul.mubr.msk.bf16.gmra.mrb[12].mxu1 %vm1706_vm0, %v1673_v2  ;;  %v1663_v1 = vsel %vm1643_vm15, %v1620_v13, %v1319_v8  ;;  %v502_v13 = vld [vmem:[%s4444_s25 + $0x118] sm:$0xff] }
 0x18a   : > { %2986 = vmatprep.mubr.msk.bf16.mxu1 %vm3091_vm6, %v4993_v18  ;;  %2031 = vperm.xlu0 %3036, %v482_v41  }
 0x18b   : > { %2963 = vmatmul.mubr.msk.bf16.gmra.mrb[36].mxu0 %vm1706_vm0, %v1663_v1  ;;  %v843_v62 = vpop.permute.xlu1 %842 }
 0x18c   : > { %2966 = vmatprep.mubr.msk.bf16.mxu0 %vm3091_vm6, %v4993_v18  ;;  %v833_v49 = vpop.permute.xlu0 %832  ;;  %v1460_v9 = vsel %vm1428_vm10, %v3962_v22, %v843_v62 }
 0x18d   : > { %2036 = vperm.xlu1 %3037, %v483_v36   ;;  %v1450_v23 = vsel %vm1428_vm10, %v3902_v56, %v833_v49  ;;  %v503_v36 = vld [vmem:[%s4444_s25 + $0x120] sm:$0xff] }
 0x18e   : > { %2041 = vperm.xlu0 %3036, %v484_v38   ;;  %v504_v38 = vld [vmem:[%s4444_s25 + $0x128] sm:$0xff] }
 0x18f   : > { %v980_v10 = vpop.permute.xlu1 %979 }
 0x190   : > { %v970_v58 = vpop.permute.xlu0 %969  ;;  %v1503_v19 = vsel %vm1471_vm11, %v1460_v9, %v980_v10 }
 0x191   : > { %2046 = vperm.xlu1 %3037, %v485_v26   ;;  %v1493_v15 = vsel %vm1471_vm11, %v1450_v23, %v970_v58 }
 0x192   : > { %2051 = vperm.xlu0 %3036, %v486_v46   ;;  %v505_v46 = vld [vmem:[%s4444_s25 + $0x130] sm:$0xff] }
 0x193   : > { %v1066_v54 = vpop.permute.xlu1 %1065 }
 0x194   : > { %v1056_v60 = vpop.permute.xlu0 %1055  ;;  %v1546_v33 = vsel %vm1514_vm12, %v1503_v19, %v1066_v54 }
 0x195   : > { %2056 = vperm.xlu1 %3037, %v487_v39   ;;  %v1536_v22 = vsel %vm1514_vm12, %v1493_v15, %v1056_v60  ;;  %v506_v39 = vld [vmem:[%s4444_s25 + $0x138] sm:$0xff]  ;;  %v507_v60 = vld [vmem:[%s4444_s25 + $0x140] sm:$0xff] }
 0x196   : > { %2061 = vperm.xlu0 %3036, %v488_v27  }
 0x197   : > { %v1110_v20 = vpop.permute.xlu1 %1109 }
 0x198   : > { %v1100_v7 = vpop.permute.xlu0 %1099  ;;  %v1589_v50 = vsel %vm1557_vm13, %v1546_v33, %v1110_v20 }
 0x199   : > { %2066 = vperm.xlu1 %3037, %v489_v59   ;;  %v1579_v28 = vsel %vm1557_vm13, %v1536_v22, %v1100_v7 }
 0x19a   : > { %2071 = vperm.xlu0 %3036, %v490_v29   ;;  %v508_v29 = vld [vmem:[%s4444_s25 + $0x148] sm:$0xff] }
 0x19b   : > { %v1245_v21 = vpop.permute.xlu1 %1244 }
 0x19c   : > { %v1235_v55 = vpop.permute.xlu0 %1234  ;;  %v1632_v32 = vsel %vm1600_vm14, %v1589_v50, %v1245_v21 }
 0x19d   : > { %2076 = vperm.xlu1 %3037, %v491_v4   ;;  %v1622_v52 = vsel %vm1600_vm14, %v1579_v28, %v1235_v55 }
 0x19e   : > { %2081 = vperm.xlu0 %3036, %v492_v48  }
 0x19f   : > { %v1331_v57 = vpop.permute.xlu1 %1330 }
 0x1a0   : > { %v1675_v56 = vsel %vm1643_vm15, %v1632_v32, %v1331_v57  ;;  %v1321_v61 = vpop.permute.xlu0 %1320 }
 0x1a1   : > { %2987 = vmatmul.mubr.msk.bf16.gmra.mrb[16].mxu1 %vm1706_vm0, %v1675_v56  ;;  %2086 = vperm.xlu1 %3037, %v493_v6   ;;  %v1665_v34 = vsel %vm1643_vm15, %v1622_v52, %v1321_v61 }
 0x1a2   : > { %2990 = vmatprep.mubr.msk.bf16.mxu1 %vm3091_vm6, %v4993_v18  ;;  %2967 = vmatmul.mubr.msk.bf16.gmra.mrb[40].mxu0 %vm1706_vm0, %v1665_v34 }
 0x1a3   : > { %v982_v12 = vpop.permute.xlu1 %981  ;;  %2091 = vperm.xlu0 %3036, %v494_v43  }
 0x1a4   : > { %v845_v3 = vpop.permute.xlu0 %844 }
 0x1a5   : > { %2096 = vperm.xlu1 %3037, %v495_v11   ;;  %v1462_v0 = vsel %vm1428_vm10, %v3952_v25, %v845_v3 }
 0x1a6   : > { %v1505_v53 = vsel %vm1471_vm11, %v1462_v0, %v982_v12 }
 0x1a7   : > { %v1112_v16 = vpop.permute.xlu1 %1111  ;;  %2101 = vperm.xlu0 %3036, %v496_v40  }
 0x1a8   : > { %v1068_v35 = vpop.permute.xlu0 %1067 }
 0x1a9   : > { %2106 = vperm.xlu1 %3037, %v497_v45   ;;  %v1548_v31 = vsel %vm1514_vm12, %v1505_v53, %v1068_v35 }
 0x1aa   : > { %v1591_v37 = vsel %vm1557_vm13, %v1548_v31, %v1112_v16 }
 0x1ab   : > { %v1333_v63 = vpop.permute.xlu1 %1332  ;;  %2111 = vperm.xlu0 %3036, %v498_v51  }
 0x1ac   : > { %v1247_v25 = vpop.permute.xlu0 %1246 }
 0x1ad   : > { %2116 = vperm.xlu1 %3037, %v499_v17   ;;  %v1634_v47 = vsel %vm1600_vm14, %v1591_v37, %v1247_v25 }
 0x1ae   : > { %v1677_v2 = vsel %vm1643_vm15, %v1634_v47, %v1333_v63 }
 0x1af   : > { %v984_v41 = vpop.permute.xlu1 %983  ;;  %2121 = vperm.xlu0 %3036, %v500_v5   ;;  %2991 = vmatmul.mubr.msk.bf16.gmra.mrb[20].mxu1 %vm1706_vm0, %v1677_v2 }
 0x1b0   : > { %v847_v8 = vpop.permute.xlu0 %846  ;;  %2994 = vmatprep.mubr.msk.bf16.mxu1 %vm3091_vm6, %v4993_v18 }
 0x1b1   : > { %2126 = vperm.xlu1 %3037, %v501_v14   ;;  %v1464_v1 = vsel %vm1428_vm10, %v3993_v42, %v847_v8 }
 0x1b2   : > { %v1507_v49 = vsel %vm1471_vm11, %v1464_v1, %v984_v41 }
 0x1b3   : > { %v1114_v62 = vpop.permute.xlu1 %1113  ;;  %2131 = vperm.xlu0 %3036, %v502_v13  }
 0x1b4   : > { %v1070_v26 = vpop.permute.xlu0 %1069 }
 0x1b5   : > { %2136 = vperm.xlu1 %3037, %v503_v36   ;;  %v1550_v10 = vsel %vm1514_vm12, %v1507_v49, %v1070_v26 }
 0x1b6   : > { %v1593_v54 = vsel %vm1557_vm13, %v1550_v10, %v1114_v62 }
 0x1b7   : > { %v1335_v58 = vpop.permute.xlu1 %1334  ;;  %2141 = vperm.xlu0 %3036, %v504_v38  }
 0x1b8   : > { %v1249_v27 = vpop.permute.xlu0 %1248 }
 0x1b9   : > { %2146 = vperm.xlu1 %3037, %v505_v46   ;;  %v1636_v42 = vsel %vm1600_vm14, %v1593_v54, %v1249_v27 }
 0x1ba   : > { %v1679_v59 = vsel %vm1643_vm15, %v1636_v42, %v1335_v58 }
 0x1bb   : > { %v986_v20 = vpop.permute.xlu1 %985  ;;  %2151 = vperm.xlu0 %3036, %v506_v39   ;;  %2995 = vmatmul.mubr.msk.bf16.gmra.mrb[24].mxu1 %vm1706_vm0, %v1679_v59 }
 0x1bc   : > { %v849_v7 = vpop.permute.xlu0 %848  ;;  %2998 = vmatprep.mubr.msk.bf16.mxu1 %vm3091_vm6, %v4993_v18 }
 0x1bd   : > { %2156 = vperm.xlu1 %3037, %v507_v60   ;;  %v1466_v4 = vsel %vm1428_vm10, %v3976_v44, %v849_v7 }
 0x1be   : > { %v1509_v21 = vsel %vm1471_vm11, %v1466_v4, %v986_v20 }
 0x1bf   : > { %v1116_v9 = vpop.permute.xlu1 %1115  ;;  %2161 = vperm.xlu0 %3036, %v508_v29  }
 0x1c0   : > { %v1072_v19 = vpop.permute.xlu0 %1071 }
 0x1c1   : > { %v1552_v48 = vsel %vm1514_vm12, %v1509_v21, %v1072_v19 }
 0x1c2   : > { %v1595_v33 = vsel %vm1557_vm13, %v1552_v48, %v1116_v9 }
 0x1c3   : > { %v1337_v23 = vpop.permute.xlu1 %1336 }
 0x1c4   : > { %v1251_v55 = vpop.permute.xlu0 %1250 }
 0x1c5   : > { %v1638_v15 = vsel %vm1600_vm14, %v1595_v33, %v1251_v55  ;;  %v1787_v50 = vpop.f32.mrb[0].mxu0 }
 0x1c6   : > { %v1681_v6 = vsel %vm1643_vm15, %v1638_v15, %v1337_v23  ;;  %v2928_v22 = vpop.f32.mrb[1].mxu0 }
 0x1c7   : > { %v988_v32 = vpop.permute.xlu1 %987  ;;  %v1790_v57 = vpop.f32.mrb[2].mxu0  ;;  %2999 = vmatmul.mubr.msk.bf16.gmra.mrb[28].mxu1 %vm1706_vm0, %v1681_v6 }
 0x1c8   : > { %v2929_v44 = vpop.f32.mrb[3].mxu0  ;;  %v851_v28 = vpop.permute.xlu0 %850  ;;  %3002 = vmatprep.mubr.msk.bf16.mxu1 %vm3091_vm6, %v4993_v18 }
 0x1c9   : > { %v1468_v56 = vsel %vm1428_vm10, %v4014_v30, %v851_v28 }
 0x1ca   : > { %v1511_v52 = vsel %vm1471_vm11, %v1468_v56, %v988_v32 }
 0x1cb   : > { %v1118_v43 = vpop.permute.xlu1 %1117 }
 0x1cc   : > { %v1074_v61 = vpop.permute.xlu0 %1073 }
 0x1cd   : > { %v1554_v34 = vsel %vm1514_vm12, %v1511_v52, %v1074_v61 }
 0x1ce   : > { %v1795_v11 = vpop.f32.mrb[4].mxu0  ;;  %v1597_v3 = vsel %vm1557_vm13, %v1554_v34, %v1118_v43 }
 0x1cf   : > { %v1339_v12 = vpop.permute.xlu1 %1338  ;;  %v2932_v40 = vpop.f32.mrb[5].mxu0 }
 0x1d0   : > { %v1798_v0 = vpop.f32.mrb[6].mxu0  ;;  %v1253_v45 = vpop.permute.xlu0 %1252 }
 0x1d1   : > { %v1640_v16 = vsel %vm1600_vm14, %v1597_v3, %v1253_v45  ;;  %v2933_v51 = vpop.f32.mrb[7].mxu0 }
 0x1d2   : > { %v1683_v53 = vsel %vm1643_vm15, %v1640_v16, %v1339_v12 }
 0x1d3   : > { %v990_v35 = vpop.permute.xlu1 %989  ;;  %3003 = vmatmul.mubr.msk.bf16.gmra.mrb[32].mxu1 %vm1706_vm0, %v1683_v53 }
 0x1d4   : > { %v853_v30 = vpop.permute.xlu0 %852  ;;  %3006 = vmatprep.mubr.msk.bf16.mxu1 %vm3091_vm6, %v4993_v18 }
 0x1d5   : > { %v1470_v31 = vsel %vm1428_vm10, %v4002_v24, %v853_v30 }
 0x1d6   : > { %v1513_v63 = vsel %vm1471_vm11, %v1470_v31, %v990_v35 }
 0x1d7   : > { %v1120_v17 = vpop.permute.xlu1 %1119 }
 0x1d8   : > { %v1076_v5 = vpop.permute.xlu0 %1075 }
 0x1d9   : > { %v1556_v37 = vsel %vm1514_vm12, %v1513_v63, %v1076_v5 }
 0x1da   : > { %v1803_v25 = vpop.f32.mrb[8].mxu0  ;;  %v1599_v2 = vsel %vm1557_vm13, %v1556_v37, %v1120_v17 }
 0x1db   : > { %v2936_v47 = vpop.f32.mrb[9].mxu0  ;;  %v1341_v14 = vpop.permute.xlu1 %1340 }
 0x1dc   : > { %v1806_v41 = vpop.f32.mrb[10].mxu0  ;;  %v1255_v13 = vpop.permute.xlu0 %1254 }
 0x1dd   : > { %v1642_v8 = vsel %vm1600_vm14, %v1599_v2, %v1255_v13  ;;  %v2937_v18 = vpop.f32.mrb[11].mxu0 }
 0x1de   : > { %v1685_v1 = vsel %vm1643_vm15, %v1642_v8, %v1341_v14 }
 0x1df   : > { %3007 = vmatmul.mubr.msk.bf16.gmra.mrb[36].mxu1 %vm1706_vm0, %v1685_v1 }
 0x1e6   : > { %v1811_v24 = vpop.f32.mrb[12].mxu0 }
 0x1e7   : > { %v2940_v36 = vpop.f32.mrb[13].mxu0 }
 0x1e8   : > { %v1814_v62 = vpop.f32.mrb[14].mxu0 }
 0x1e9   : > { %v2941_v38 = vpop.f32.mrb[15].mxu0 }
 0x1ec   : > { %v1962_v49 = vpop.permute.xlu1 %1961 }
 0x1ed   : > { %v2165_v26 = vmul.f32 %v1962_v49, %v1790_v57  ;;  %v1957_v10 = vpop.permute.xlu0 %1956 }
 0x1ee   : > { %v2164_v54 = vmul.f32 %v1957_v10, %v1787_v50 }
 0x1ef   : > { %v2855_v46 = vpack.c.bf16 %v2165_v26, %v2165_v26  ;;  %v2418_v58 = vsel %vm1643_vm15, %v2165_v26, 0.0  ;;  %v2507_v39 = vmul.f32 %v2165_v26, %v2165_v26 }
 0x1f0   : > { %v1967_v27 = vpop.permute.xlu1 %1966  ;;  %v2854_v60 = vpack.c.bf16 %v2164_v54, %v2164_v54  ;;  %v2417_v59 = vsel %vm1643_vm15, %v2164_v54, 0.0  ;;  %v2506_v20 = vmul.f32 %v2164_v54, %v2164_v54 }
 0x1f1   : > { %2376 = vst.msk [vmem:[%s4601_s29 + $0x4] sm:$0xf] %vm2374_vm1, %v2855_v46  ;;  %v2549_v42 = vsel %vm1643_vm15, %v2507_v39, 0.0  ;;  %v2419_v29 = vadd.f32 %v2418_v58, %v2417_v59  ;;  %v2166_v7 = vmul.f32 %v1967_v27, %v1795_v11  ;;  %v1972_v4 = vpop.permute.xlu0 %1971 }
 0x1f2   : > { %2375 = vst.msk [vmem:[%s4601_s29] sm:$0xf] %vm2374_vm1, %v2854_v60  ;;  %v2548_v9 = vsel %vm1643_vm15, %v2506_v20, 0.0  ;;  %v2167_v21 = vmul.f32 %v1972_v4, %v1798_v0  ;;  %v1819_v19 = vpop.f32.mrb[16].mxu0 }
 0x1f3   : > { %v2550_v48 = vadd.f32 %v2549_v42, %v2548_v9  ;;  %v2856_v23 = vpack.c.bf16 %v2166_v7, %v2166_v7  ;;  %v2420_v33 = vsel %vm1643_vm15, %v2166_v7, 0.0  ;;  %v2508_v55 = vmul.f32 %v2166_v7, %v2166_v7  ;;  %v2944_v15 = vpop.f32.mrb[17].mxu0 }
 0x1f4   : > { %v1977_v50 = vpop.permute.xlu1 %1976  ;;  %v2421_v6 = vadd.f32 %v2420_v33, %v2419_v29  ;;  %v2857_v22 = vpack.c.bf16 %v2167_v21, %v2167_v21  ;;  %v2509_v32 = vmul.f32 %v2167_v21, %v2167_v21  ;;  %v1822_v57 = vpop.f32.mrb[18].mxu0  ;;  %v2422_v28 = vsel %vm1643_vm15, %v2167_v21, 0.0 }
 0x1f5   : > { %2377 = vst.msk [vmem:[%s4601_s29 + $0x8] sm:$0xf] %vm2374_vm1, %v2856_v23  ;;  %v2551_v44 = vsel %vm1643_vm15, %v2508_v55, 0.0  ;;  %v2168_v56 = vmul.f32 %v1977_v50, %v1803_v25  ;;  %v2945_v43 = vpop.f32.mrb[19].mxu0  ;;  %v1982_v52 = vpop.permute.xlu0 %1981 }
 0x1f6   : > { %v2552_v61 = vadd.f32 %v2551_v44, %v2550_v48  ;;  %2378 = vst.msk [vmem:[%s4601_s29 + $0xc] sm:$0xf] %vm2374_vm1, %v2857_v22  ;;  %v2423_v34 = vadd.f32 %v2422_v28, %v2421_v6  ;;  %v2169_v11 = vmul.f32 %v1982_v52, %v1806_v41  ;;  %v2553_v12 = vsel %vm1643_vm15, %v2509_v32, 0.0 }
 0x1f7   : > { %v2858_v40 = vpack.c.bf16 %v2168_v56, %v2168_v56  ;;  %v2424_v3 = vsel %vm1643_vm15, %v2168_v56, 0.0  ;;  %v2510_v0 = vmul.f32 %v2168_v56, %v2168_v56 }
 0x1f8   : > { %v1987_v45 = vpop.permute.xlu1 %1986  ;;  %v2554_v16 = vadd.f32 %v2553_v12, %v2552_v61  ;;  %v2425_v51 = vadd.f32 %v2424_v3, %v2423_v34  ;;  %v2859_v53 = vpack.c.bf16 %v2169_v11, %v2169_v11  ;;  %v2426_v30 = vsel %vm1643_vm15, %v2169_v11, 0.0 }
 0x1f9   : > { %2379 = vst.msk [vmem:[%s4601_s29 + $0x10] sm:$0xf] %vm2374_vm1, %v2858_v40  ;;  %v2555_v35 = vsel %vm1643_vm15, %v2510_v0, 0.0  ;;  %v2511_v31 = vmul.f32 %v2169_v11, %v2169_v11  ;;  %v2170_v17 = vmul.f32 %v1987_v45, %v1811_v24  ;;  %v1992_v63 = vpop.permute.xlu0 %1991 }
 0x1fa   : > { %v2556_v5 = vadd.f32 %v2555_v35, %v2554_v16  ;;  %2380 = vst.msk [vmem:[%s4601_s29 + $0x14] sm:$0xf] %vm2374_vm1, %v2859_v53  ;;  %v2427_v37 = vadd.f32 %v2426_v30, %v2425_v51  ;;  %v2171_v25 = vmul.f32 %v1992_v63, %v1814_v62 }
 0x1fb   : > { %v2557_v47 = vsel %vm1643_vm15, %v2511_v31, 0.0  ;;  %v2860_v14 = vpack.c.bf16 %v2170_v17, %v2170_v17  ;;  %v2428_v2 = vsel %vm1643_vm15, %v2170_v17, 0.0  ;;  %v2512_v41 = vmul.f32 %v2170_v17, %v2170_v17 }
 0x1fc   : > { %v1997_v13 = vpop.permute.xlu1 %1996  ;;  %v2558_v8 = vadd.f32 %v2557_v47, %v2556_v5  ;;  %v2429_v18 = vadd.f32 %v2428_v2, %v2427_v37  ;;  %v2861_v1 = vpack.c.bf16 %v2171_v25, %v2171_v25  ;;  %v2430_v36 = vsel %vm1643_vm15, %v2171_v25, 0.0 }
 0x1fd   : > { %2381 = vst.msk [vmem:[%s4601_s29 + $0x18] sm:$0xf] %vm2374_vm1, %v2860_v14  ;;  %v2559_v24 = vsel %vm1643_vm15, %v2512_v41, 0.0  ;;  %v2513_v38 = vmul.f32 %v2171_v25, %v2171_v25  ;;  %v2172_v49 = vmul.f32 %v1997_v13, %v1819_v19  ;;  %v2002_v62 = vpop.permute.xlu0 %2001 }
 0x1fe   : > { %v2560_v26 = vadd.f32 %v2559_v24, %v2558_v8  ;;  %2382 = vst.msk [vmem:[%s4601_s29 + $0x1c] sm:$0xf] %vm2374_vm1, %v2861_v1  ;;  %v2431_v10 = vadd.f32 %v2430_v36, %v2429_v18  ;;  %v2173_v46 = vmul.f32 %v2002_v62, %v1822_v57  ;;  %v1827_v58 = vpop.f32.mrb[20].mxu0 }
 0x1ff   : > { %v2561_v39 = vsel %vm1643_vm15, %v2513_v38, 0.0  ;;  %v2862_v54 = vpack.c.bf16 %v2172_v49, %v2172_v49  ;;  %v2432_v27 = vsel %vm1643_vm15, %v2172_v49, 0.0  ;;  %v2514_v42 = vmul.f32 %v2172_v49, %v2172_v49  ;;  %v2948_v60 = vpop.f32.mrb[21].mxu0 }
 0x200   : > { %v2007_v59 = vpop.permute.xlu1 %2006  ;;  %v2562_v20 = vadd.f32 %v2561_v39, %v2560_v26  ;;  %v2433_v29 = vadd.f32 %v2432_v27, %v2431_v10  ;;  %v2863_v7 = vpack.c.bf16 %v2173_v46, %v2173_v46  ;;  %v1830_v4 = vpop.f32.mrb[22].mxu0  ;;  %v2434_v21 = vsel %vm1643_vm15, %v2173_v46, 0.0 }
 0x201   : > { %2383 = vst.msk [vmem:[%s4601_s29 + $0x20] sm:$0xf] %vm2374_vm1, %v2862_v54  ;;  %v2563_v9 = vsel %vm1643_vm15, %v2514_v42, 0.0  ;;  %v2515_v19 = vmul.f32 %v2173_v46, %v2173_v46  ;;  %v2174_v48 = vmul.f32 %v2007_v59, %v1827_v58  ;;  %v2949_v23 = vpop.f32.mrb[23].mxu0  ;;  %v2012_v33 = vpop.permute.xlu0 %2011 }
 0x202   : > { %v2564_v55 = vadd.f32 %v2563_v9, %v2562_v20  ;;  %2384 = vst.msk [vmem:[%s4601_s29 + $0x24] sm:$0xf] %vm2374_vm1, %v2863_v7  ;;  %v2435_v15 = vadd.f32 %v2434_v21, %v2433_v29  ;;  %v2175_v50 = vmul.f32 %v2012_v33, %v1830_v4 }
 0x203   : > { %v2565_v6 = vsel %vm1643_vm15, %v2515_v19, 0.0  ;;  %v2864_v22 = vpack.c.bf16 %v2174_v48, %v2174_v48  ;;  %v2436_v32 = vsel %vm1643_vm15, %v2174_v48, 0.0  ;;  %v2516_v57 = vmul.f32 %v2174_v48, %v2174_v48 }
 0x204   : > { %v2017_v44 = vpop.permute.xlu1 %2016  ;;  %v2566_v28 = vadd.f32 %v2565_v6, %v2564_v55  ;;  %v2437_v56 = vadd.f32 %v2436_v32, %v2435_v15  ;;  %v2865_v43 = vpack.c.bf16 %v2175_v50, %v2175_v50  ;;  %v2438_v61 = vsel %vm1643_vm15, %v2175_v50, 0.0 }
 0x205   : > { %2385 = vst.msk [vmem:[%s4601_s29 + $0x28] sm:$0xf] %vm2374_vm1, %v2864_v22  ;;  %v2567_v52 = vsel %vm1643_vm15, %v2516_v57, 0.0  ;;  %v2517_v34 = vmul.f32 %v2175_v50, %v2175_v50  ;;  %v2022_v11 = vpop.permute.xlu0 %2021 }
 0x206   : > { %v2568_v12 = vadd.f32 %v2567_v52, %v2566_v28  ;;  %2386 = vst.msk [vmem:[%s4601_s29 + $0x2c] sm:$0xf] %vm2374_vm1, %v2865_v43  ;;  %v2439_v40 = vadd.f32 %v2438_v61, %v2437_v56 }
 0x207   : > { %v2569_v3 = vsel %vm1643_vm15, %v2517_v34, 0.0 }
 0x208   : > { %v2027_v0 = vpop.permute.xlu1 %2026  ;;  %v2570_v45 = vadd.f32 %v2569_v3, %v2568_v12 }
 0x209   : > { %v2032_v16 = vpop.permute.xlu0 %2031 }
 0x20c   : > { %v4651_v51 = vpop.permute.xlu1 %2036 }
 0x20d   : > { %v4653_v53 = vpop.permute.xlu0 %2041 }
 0x210   : > { %v4655_v35 = vpop.permute.xlu1 %2046 }
 0x211   : > { %v4657_v30 = vpop.permute.xlu0 %2051 }
 0x214   : > { %v4659_v31 = vpop.permute.xlu1 %2056  ;;  %v1875_v17 = vpop.f32.mrb[0].mxu1 }
 0x215   : > { %v2972_v63 = vpop.f32.mrb[1].mxu1  ;;  %v4661_v37 = vpop.permute.xlu0 %2061 }
 0x216   : > { %v1835_v5 = vpop.f32.mrb[24].mxu0  ;;  %v1878_v14 = vpop.f32.mrb[2].mxu1 }
 0x217   : > { %v2176_v25 = vmul.f32 %v2017_v44, %v1835_v5  ;;  %v2952_v47 = vpop.f32.mrb[25].mxu0  ;;  %v2973_v41 = vpop.f32.mrb[3].mxu1 }
 0x218   : > { %v1838_v2 = vpop.f32.mrb[26].mxu0  ;;  %v2067_v36 = vpop.permute.xlu1 %2066 }
 0x219   : > { %v2866_v13 = vpack.c.bf16 %v2176_v25, %v2176_v25  ;;  %v2440_v8 = vsel %vm1643_vm15, %v2176_v25, 0.0  ;;  %v2518_v18 = vmul.f32 %v2176_v25, %v2176_v25  ;;  %v2177_v1 = vmul.f32 %v2022_v11, %v1838_v2  ;;  %v2953_v24 = vpop.f32.mrb[27].mxu0  ;;  %v2072_v62 = vpop.permute.xlu0 %2071 }
 0x21a   : > { %v2441_v38 = vadd.f32 %v2440_v8, %v2439_v40  ;;  %v4664_v49 = vmul.f32 %v2067_v36, %v1875_v17  ;;  %v4675_v60 = vmul.f32 %v2072_v62, %v1878_v14 }
 0x21b   : > { %2387 = vst.msk [vmem:[%s4601_s29 + $0x30] sm:$0xf] %vm2374_vm1, %v2866_v13  ;;  %v2571_v26 = vsel %vm1643_vm15, %v2518_v18, 0.0  ;;  %v2867_v10 = vpack.c.bf16 %v2177_v1, %v2177_v1  ;;  %v2442_v46 = vsel %vm1643_vm15, %v2177_v1, 0.0  ;;  %v2519_v58 = vmul.f32 %v2177_v1, %v2177_v1 }
 0x21c   : > { %v2572_v39 = vadd.f32 %v2571_v26, %v2570_v45  ;;  %v2443_v54 = vadd.f32 %v2442_v46, %v2441_v38  ;;  %v2876_v27 = vpack.c.bf16 %v4664_v49, %v4664_v49  ;;  %v2877_v20 = vpack.c.bf16 %v4675_v60, %v4675_v60  ;;  %v2077_v29 = vpop.permute.xlu1 %2076 }
 0x21d   : > { %2388 = vst.msk [vmem:[%s4601_s29 + $0x34] sm:$0xf] %vm2374_vm1, %v2867_v10  ;;  %v2573_v42 = vsel %vm1643_vm15, %v2519_v58, 0.0  ;;  %v2082_v21 = vpop.permute.xlu0 %2081 }
 0x21e   : > { %v2574_v59 = vadd.f32 %v2573_v42, %v2572_v39  ;;  %2397 = vst.msk [vmem:[%s4601_s29 + $0x58] sm:$0xf] %vm2374_vm1, %v2876_v27  ;;  %2398 = vst.msk [vmem:[%s4601_s29 + $0x5c] sm:$0xf] %vm2374_vm1, %v2877_v20 }
 0x220   : > { %v2087_v45 = vpop.permute.xlu1 %2086 }
 0x222   : > { %v2092_v5 = vpop.permute.xlu0 %2091 }
 0x22c   : > { %v1883_v7 = vpop.f32.mrb[4].mxu1 }
 0x22d   : > { %v4683_v4 = vmul.f32 %v2077_v29, %v1883_v7  ;;  %v2976_v9 = vpop.f32.mrb[5].mxu1  ;;  %v2102_v29 = vpop.permute.xlu0 %2101 }
 0x22e   : > { %v1843_v19 = vpop.f32.mrb[28].mxu0  ;;  %v1886_v48 = vpop.f32.mrb[6].mxu1 }
 0x22f   : > { %v2178_v23 = vmul.f32 %v2027_v0, %v1843_v19  ;;  %v2878_v33 = vpack.c.bf16 %v4683_v4, %v4683_v4  ;;  %v2956_v55 = vpop.f32.mrb[29].mxu0  ;;  %v2977_v15 = vpop.f32.mrb[7].mxu1  ;;  %v4687_v6 = vmul.f32 %v2082_v21, %v1886_v48 }
 0x230   : > { %v1846_v50 = vpop.f32.mrb[30].mxu0 }
 0x231   : > { %v2868_v22 = vpack.c.bf16 %v2178_v23, %v2178_v23  ;;  %v2444_v32 = vsel %vm1643_vm15, %v2178_v23, 0.0  ;;  %v2520_v57 = vmul.f32 %v2178_v23, %v2178_v23  ;;  %2399 = vst.msk [vmem:[%s4601_s29 + $0x60] sm:$0xf] %vm2374_vm1, %v2878_v33  ;;  %v2957_v44 = vpop.f32.mrb[31].mxu0  ;;  %v2179_v56 = vmul.f32 %v2032_v16, %v1846_v50 }
 0x232   : > { %v2445_v28 = vadd.f32 %v2444_v32, %v2443_v54  ;;  %v2879_v43 = vpack.c.bf16 %v4687_v6, %v4687_v6 }
 0x233   : > { %2389 = vst.msk [vmem:[%s4601_s29 + $0x38] sm:$0xf] %vm2374_vm1, %v2868_v22  ;;  %v2575_v52 = vsel %vm1643_vm15, %v2520_v57, 0.0  ;;  %v2869_v34 = vpack.c.bf16 %v2179_v56, %v2179_v56  ;;  %v2446_v11 = vsel %vm1643_vm15, %v2179_v56, 0.0  ;;  %v2521_v12 = vmul.f32 %v2179_v56, %v2179_v56 }
 0x234   : > { %v2576_v61 = vadd.f32 %v2575_v52, %v2574_v59  ;;  %2400 = vst.msk [vmem:[%s4601_s29 + $0x64] sm:$0xf] %vm2374_vm1, %v2879_v43  ;;  %v2447_v40 = vadd.f32 %v2446_v11, %v2445_v28  ;;  %v2097_v59 = vpop.permute.xlu1 %2096 }
 0x235   : > { %2390 = vst.msk [vmem:[%s4601_s29 + $0x3c] sm:$0xf] %vm2374_vm1, %v2869_v34  ;;  %v2577_v3 = vsel %vm1643_vm15, %v2521_v12, 0.0 }
 0x236   : > { %v2578_v0 = vadd.f32 %v2577_v3, %v2576_v61 }
 0x238   : > { %v2107_v3 = vpop.permute.xlu1 %2106 }
 0x244   : > { %v1891_v16 = vpop.f32.mrb[8].mxu1 }
 0x245   : > { %v4703_v17 = vmul.f32 %v2087_v45, %v1891_v16  ;;  %v2980_v63 = vpop.f32.mrb[9].mxu1  ;;  %v2112_v45 = vpop.permute.xlu0 %2111 }
 0x246   : > { %v1851_v25 = vpop.f32.mrb[32].mxu0  ;;  %v1894_v47 = vpop.f32.mrb[10].mxu1 }
 0x247   : > { %v2180_v14 = vmul.f32 %v4651_v51, %v1851_v25  ;;  %v2880_v2 = vpack.c.bf16 %v4703_v17, %v4703_v17  ;;  %v2960_v41 = vpop.f32.mrb[33].mxu0  ;;  %v2981_v13 = vpop.f32.mrb[11].mxu1  ;;  %v4708_v18 = vmul.f32 %v2092_v5, %v1894_v47 }
 0x248   : > { %v1854_v8 = vpop.f32.mrb[34].mxu0 }
 0x249   : > { %v2870_v1 = vpack.c.bf16 %v2180_v14, %v2180_v14  ;;  %v2448_v24 = vsel %vm1643_vm15, %v2180_v14, 0.0  ;;  %v2522_v36 = vmul.f32 %v2180_v14, %v2180_v14  ;;  %2401 = vst.msk [vmem:[%s4601_s29 + $0x68] sm:$0xf] %vm2374_vm1, %v2880_v2  ;;  %v2961_v38 = vpop.f32.mrb[35].mxu0  ;;  %v2181_v51 = vmul.f32 %v4653_v53, %v1854_v8 }
 0x24a   : > { %v2449_v62 = vadd.f32 %v2448_v24, %v2447_v40  ;;  %v2881_v26 = vpack.c.bf16 %v4708_v18, %v4708_v18 }
 0x24b   : > { %2391 = vst.msk [vmem:[%s4601_s29 + $0x40] sm:$0xf] %vm2374_vm1, %v2870_v1  ;;  %v2579_v10 = vsel %vm1643_vm15, %v2522_v36, 0.0  ;;  %v2871_v58 = vpack.c.bf16 %v2181_v51, %v2181_v51  ;;  %v2450_v39 = vsel %vm1643_vm15, %v2181_v51, 0.0  ;;  %v2523_v54 = vmul.f32 %v2181_v51, %v2181_v51 }
 0x24c   : > { %v2580_v46 = vadd.f32 %v2579_v10, %v2578_v0  ;;  %2402 = vst.msk [vmem:[%s4601_s29 + $0x6c] sm:$0xf] %vm2374_vm1, %v2881_v26  ;;  %v2451_v27 = vadd.f32 %v2450_v39, %v2449_v62  ;;  %v2528_v26 = vmul.f32 %v4664_v49, %v4664_v49 }
 0x24d   : > { %2392 = vst.msk [vmem:[%s4601_s29 + $0x44] sm:$0xf] %vm2374_vm1, %v2871_v58  ;;  %v2581_v42 = vsel %vm1643_vm15, %v2523_v54, 0.0 }
 0x24e   : > { %v2582_v53 = vadd.f32 %v2581_v42, %v2580_v46  ;;  %v2529_v42 = vmul.f32 %v4675_v60, %v4675_v60 }
 0x25c   : > { %v1899_v20 = vpop.f32.mrb[12].mxu1 }
 0x25d   : > { %v4725_v7 = vmul.f32 %v2097_v59, %v1899_v20  ;;  %v2984_v9 = vpop.f32.mrb[13].mxu1 }
 0x25e   : > { %v1859_v21 = vpop.f32.mrb[36].mxu0  ;;  %v1902_v19 = vpop.f32.mrb[14].mxu1  ;;  %v2462_v9 = vsel %vm1643_vm15, %v4675_v60, 0.0  ;;  %v2466_v60 = vsel %vm1643_vm15, %v4687_v6, 0.0 }
 0x25f   : > { %v2182_v48 = vmul.f32 %v4655_v35, %v1859_v21  ;;  %v2882_v23 = vpack.c.bf16 %v4725_v7, %v4725_v7  ;;  %v2964_v33 = vpop.f32.mrb[37].mxu0  ;;  %v2985_v55 = vpop.f32.mrb[15].mxu1  ;;  %v4730_v50 = vmul.f32 %v2102_v29, %v1902_v19  ;;  %v2591_v29 = vsel %vm1643_vm15, %v2528_v26, 0.0 }
 0x260   : > { %v1862_v15 = vpop.f32.mrb[38].mxu0  ;;  %v2530_v21 = vmul.f32 %v4683_v4, %v4683_v4  ;;  %v2464_v33 = vsel %vm1643_vm15, %v4683_v4, 0.0  ;;  %v2117_v55 = vpop.permute.xlu1 %2116 }
 0x261   : > { %v2872_v22 = vpack.c.bf16 %v2182_v48, %v2182_v48  ;;  %v2452_v32 = vsel %vm1643_vm15, %v2182_v48, 0.0  ;;  %v2524_v57 = vmul.f32 %v2182_v48, %v2182_v48  ;;  %2403 = vst.msk [vmem:[%s4601_s29 + $0x70] sm:$0xf] %vm2374_vm1, %v2882_v23  ;;  %v2965_v44 = vpop.f32.mrb[39].mxu0  ;;  %v2183_v35 = vmul.f32 %v4657_v30, %v1862_v15 }
 0x262   : > { %v2453_v28 = vadd.f32 %v2452_v32, %v2451_v27  ;;  %v2883_v56 = vpack.c.bf16 %v4730_v50, %v4730_v50  ;;  %v2593_v23 = vsel %vm1643_vm15, %v2529_v42, 0.0  ;;  %v2532_v44 = vmul.f32 %v4703_v17, %v4703_v17 }
 0x263   : > { %2393 = vst.msk [vmem:[%s4601_s29 + $0x48] sm:$0xf] %vm2374_vm1, %v2872_v22  ;;  %v2583_v43 = vsel %vm1643_vm15, %v2524_v57, 0.0  ;;  %v2873_v61 = vpack.c.bf16 %v2183_v35, %v2183_v35  ;;  %v2454_v34 = vsel %vm1643_vm15, %v2183_v35, 0.0  ;;  %v2525_v11 = vmul.f32 %v2183_v35, %v2183_v35 }
 0x264   : > { %v2584_v52 = vadd.f32 %v2583_v43, %v2582_v53  ;;  %2404 = vst.msk [vmem:[%s4601_s29 + $0x74] sm:$0xf] %vm2374_vm1, %v2883_v56  ;;  %v2455_v12 = vadd.f32 %v2454_v34, %v2453_v28  ;;  %v2595_v57 = vsel %vm1643_vm15, %v2530_v21, 0.0  ;;  %v2122_v43 = vpop.permute.xlu0 %2121  ;;  %v2468_v34 = vsel %vm1643_vm15, %v4703_v17, 0.0 }
 0x265   : > { %2394 = vst.msk [vmem:[%s4601_s29 + $0x4c] sm:$0xf] %vm2374_vm1, %v2873_v61  ;;  %v2585_v40 = vsel %vm1643_vm15, %v2525_v11, 0.0  ;;  %v2533_v11 = vmul.f32 %v4708_v18, %v4708_v18 }
 0x266   : > { %v2586_v30 = vadd.f32 %v2585_v40, %v2584_v52 }
 0x274   : > { %v1907_v0 = vpop.f32.mrb[16].mxu1 }
 0x275   : > { %v4747_v16 = vmul.f32 %v2107_v3, %v1907_v0  ;;  %v2988_v63 = vpop.f32.mrb[17].mxu1  ;;  %v1867_v5 = vpop.f32.mrb[40].mxu0  ;;  %v2599_v0 = vsel %vm1643_vm15, %v2532_v44, 0.0 }
 0x276   : > { %v1910_v25 = vpop.f32.mrb[18].mxu1  ;;  %v2184_v47 = vmul.f32 %v4659_v31, %v1867_v5  ;;  %v2968_v2 = vpop.f32.mrb[41].mxu0  ;;  %v2534_v63 = vmul.f32 %v4725_v7, %v4725_v7 }
 0x277   : > { %v2884_v14 = vpack.c.bf16 %v4747_v16, %v4747_v16  ;;  %v2989_v41 = vpop.f32.mrb[19].mxu1  ;;  %v1870_v13 = vpop.f32.mrb[42].mxu0  ;;  %v4752_v8 = vmul.f32 %v2112_v45, %v1910_v25  ;;  %v2470_v45 = vsel %vm1643_vm15, %v4708_v18, 0.0  ;;  %v2535_v2 = vmul.f32 %v4730_v50, %v4730_v50 }
 0x278   : > { %v2874_v1 = vpack.c.bf16 %v2184_v47, %v2184_v47  ;;  %v2456_v24 = vsel %vm1643_vm15, %v2184_v47, 0.0  ;;  %v2526_v36 = vmul.f32 %v2184_v47, %v2184_v47  ;;  %v2969_v38 = vpop.f32.mrb[43].mxu0  ;;  %v2185_v31 = vmul.f32 %v4661_v37, %v1870_v13 }
 0x279   : > { %2405 = vst.msk [vmem:[%s4601_s29 + $0x78] sm:$0xf] %vm2374_vm1, %v2884_v14  ;;  %v2457_v62 = vadd.f32 %v2456_v24, %v2455_v12  ;;  %v2885_v51 = vpack.c.bf16 %v4752_v8, %v4752_v8  ;;  %v2460_v37 = vsel %vm1643_vm15, %v4664_v49, 0.0  ;;  %v2531_v49 = vmul.f32 %v4687_v6, %v4687_v6 }
 0x27a   : > { %2395 = vst.msk [vmem:[%s4601_s29 + $0x50] sm:$0xf] %vm2374_vm1, %v2874_v1  ;;  %v2587_v10 = vsel %vm1643_vm15, %v2526_v36, 0.0  ;;  %v2875_v58 = vpack.c.bf16 %v2185_v31, %v2185_v31  ;;  %v2458_v39 = vsel %vm1643_vm15, %v2185_v31, 0.0  ;;  %v2527_v54 = vmul.f32 %v2185_v31, %v2185_v31 }
 0x27b   : > { %v2588_v46 = vadd.f32 %v2587_v10, %v2586_v30  ;;  %2406 = vst.msk [vmem:[%s4601_s29 + $0x7c] sm:$0xf] %vm2374_vm1, %v2885_v51  ;;  %v2459_v27 = vadd.f32 %v2458_v39, %v2457_v62  ;;  %v2597_v56 = vsel %vm1643_vm15, %v2531_v49, 0.0  ;;  %v2601_v47 = vsel %vm1643_vm15, %v2533_v11, 0.0  ;;  %v2127_v51 = vpop.permute.xlu1 %2126 }
 0x27c   : > { %2396 = vst.msk [vmem:[%s4601_s29 + $0x54] sm:$0xf] %vm2374_vm1, %v2875_v58  ;;  %v2589_v53 = vsel %vm1643_vm15, %v2527_v54, 0.0  ;;  %v2472_v14 = vsel %vm1643_vm15, %v4725_v7, 0.0  ;;  %v2603_v13 = vsel %vm1643_vm15, %v2534_v63, 0.0  ;;  %v2474_v1 = vsel %vm1643_vm15, %v4730_v50, 0.0 }
 0x27d   : > { %v2461_v59 = vadd.f32 %v2460_v37, %v2459_v27  ;;  %v2590_v20 = vadd.f32 %v2589_v53, %v2588_v46  ;;  %v2536_v24 = vmul.f32 %v4747_v16, %v4747_v16  ;;  %v2537_v38 = vmul.f32 %v4752_v8, %v4752_v8  ;;  %v2132_v37 = vpop.permute.xlu0 %2131 }
 0x27e   : > { %v2605_v62 = vsel %vm1643_vm15, %v2535_v2, 0.0  ;;  %v2476_v31 = vsel %vm1643_vm15, %v4747_v16, 0.0  ;;  %v2478_v50 = vsel %vm1643_vm15, %v4752_v8, 0.0 }
 0x27f   : > { %v2463_v19 = vadd.f32 %v2462_v9, %v2461_v59  ;;  %v2592_v48 = vadd.f32 %v2591_v29, %v2590_v20  ;;  %v2607_v58 = vsel %vm1643_vm15, %v2536_v24, 0.0  ;;  %v2609_v59 = vsel %vm1643_vm15, %v2537_v38, 0.0 }
 0x281   : > { %v2465_v15 = vadd.f32 %v2464_v33, %v2463_v19  ;;  %v2594_v22 = vadd.f32 %v2593_v23, %v2592_v48 }
 0x282   : > { %v1915_v32 = vpop.f32.mrb[20].mxu1 }
 0x283   : > { %v2196_v28 = vmul.f32 %v2117_v55, %v1915_v32  ;;  %v2992_v35 = vpop.f32.mrb[21].mxu1  ;;  %v2467_v52 = vadd.f32 %v2466_v60, %v2465_v15  ;;  %v2596_v4 = vadd.f32 %v2595_v57, %v2594_v22 }
 0x284   : > { %v1918_v61 = vpop.f32.mrb[22].mxu1 }
 0x285   : > { %v2886_v6 = vpack.c.bf16 %v2196_v28, %v2196_v28  ;;  %v2197_v12 = vmul.f32 %v2122_v43, %v1918_v61  ;;  %v2993_v40 = vpop.f32.mrb[23].mxu1  ;;  %v2598_v30 = vadd.f32 %v2597_v56, %v2596_v4  ;;  %v2469_v3 = vadd.f32 %v2468_v34, %v2467_v52  ;;  %v2137_v61 = vpop.permute.xlu1 %2136 }
 0x286   : > { %v2538_v39 = vmul.f32 %v2196_v28, %v2196_v28  ;;  %v2480_v16 = vsel %vm1643_vm15, %v2196_v28, 0.0  ;;  %v2142_v40 = vpop.permute.xlu0 %2141 }
 0x287   : > { %2407 = vst.msk [vmem:[%s4601_s29 + $0x80] sm:$0xf] %vm2374_vm1, %v2886_v6  ;;  %v2887_v17 = vpack.c.bf16 %v2197_v12, %v2197_v12  ;;  %v2471_v5 = vadd.f32 %v2470_v45, %v2469_v3  ;;  %v2600_v25 = vadd.f32 %v2599_v0, %v2598_v30  ;;  %v2539_v29 = vmul.f32 %v2197_v12, %v2197_v12 }
 0x288   : > { %v2611_v8 = vsel %vm1643_vm15, %v2538_v39, 0.0  ;;  %v2482_v23 = vsel %vm1643_vm15, %v2197_v12, 0.0 }
 0x289   : > { %2408 = vst.msk [vmem:[%s4601_s29 + $0x84] sm:$0xf] %vm2374_vm1, %v2887_v17  ;;  %v2473_v41 = vadd.f32 %v2472_v14, %v2471_v5  ;;  %v2602_v18 = vadd.f32 %v2601_v47, %v2600_v25  ;;  %v2613_v32 = vsel %vm1643_vm15, %v2539_v29, 0.0  ;;  %v2147_v24 = vpop.permute.xlu1 %2146 }
 0x28b   : > { %v2475_v36 = vadd.f32 %v2474_v1, %v2473_v41  ;;  %v2604_v7 = vadd.f32 %v2603_v13, %v2602_v18 }
 0x28d   : > { %v2477_v26 = vadd.f32 %v2476_v31, %v2475_v36  ;;  %v2606_v10 = vadd.f32 %v2605_v62, %v2604_v7  ;;  %v2152_v62 = vpop.permute.xlu0 %2151 }
 0x28e   : > { %v1923_v46 = vpop.f32.mrb[24].mxu1 }
 0x28f   : > { %v2198_v54 = vmul.f32 %v2127_v51, %v1923_v46  ;;  %v2996_v27 = vpop.f32.mrb[25].mxu1  ;;  %v2479_v42 = vadd.f32 %v2478_v50, %v2477_v26  ;;  %v2608_v53 = vadd.f32 %v2607_v58, %v2606_v10 }
 0x290   : > { %v1926_v20 = vpop.f32.mrb[26].mxu1 }
 0x291   : > { %v2888_v9 = vpack.c.bf16 %v2198_v54, %v2198_v54  ;;  %v2199_v21 = vmul.f32 %v2132_v37, %v1926_v20  ;;  %v2997_v49 = vpop.f32.mrb[27].mxu1  ;;  %v2610_v19 = vadd.f32 %v2609_v59, %v2608_v53  ;;  %v2481_v48 = vadd.f32 %v2480_v16, %v2479_v42  ;;  %v2157_v16 = vpop.permute.xlu1 %2156 }
 0x292   : > { %v2540_v33 = vmul.f32 %v2198_v54, %v2198_v54  ;;  %v2484_v57 = vsel %vm1643_vm15, %v2198_v54, 0.0  ;;  %v2162_v49 = vpop.permute.xlu0 %2161 }
 0x293   : > { %2409 = vst.msk [vmem:[%s4601_s29 + $0x88] sm:$0xf] %vm2374_vm1, %v2888_v9  ;;  %v2889_v55 = vpack.c.bf16 %v2199_v21, %v2199_v21  ;;  %v2612_v15 = vadd.f32 %v2611_v8, %v2610_v19  ;;  %v2483_v22 = vadd.f32 %v2482_v23, %v2481_v48  ;;  %v2541_v60 = vmul.f32 %v2199_v21, %v2199_v21 }
 0x294   : > { %v2615_v35 = vsel %vm1643_vm15, %v2540_v33, 0.0  ;;  %v2486_v56 = vsel %vm1643_vm15, %v2199_v21, 0.0 }
 0x295   : > { %2410 = vst.msk [vmem:[%s4601_s29 + $0x8c] sm:$0xf] %vm2374_vm1, %v2889_v55  ;;  %v2614_v44 = vadd.f32 %v2613_v32, %v2612_v15  ;;  %v2485_v28 = vadd.f32 %v2484_v57, %v2483_v22  ;;  %v2617_v4 = vsel %vm1643_vm15, %v2541_v60, 0.0 }
 0x297   : > { %v2616_v43 = vadd.f32 %v2615_v35, %v2614_v44  ;;  %v2487_v52 = vadd.f32 %v2486_v56, %v2485_v28 }
 0x299   : > { %v2618_v34 = vadd.f32 %v2617_v4, %v2616_v43 }
 0x29a   : > { %v1931_v11 = vpop.f32.mrb[28].mxu1 }
 0x29b   : > { %v2200_v6 = vmul.f32 %v2137_v61, %v1931_v11  ;;  %v3000_v12 = vpop.f32.mrb[29].mxu1 }
 0x29c   : > { %v1934_v30 = vpop.f32.mrb[30].mxu1 }
 0x29d   : > { %v2890_v3 = vpack.c.bf16 %v2200_v6, %v2200_v6  ;;  %v2488_v0 = vsel %vm1643_vm15, %v2200_v6, 0.0  ;;  %v2542_v45 = vmul.f32 %v2200_v6, %v2200_v6  ;;  %v2201_v63 = vmul.f32 %v2142_v40, %v1934_v30  ;;  %v3001_v17 = vpop.f32.mrb[31].mxu1 }
 0x29e   : > { %v2489_v5 = vadd.f32 %v2488_v0, %v2487_v52 }
 0x29f   : > { %2411 = vst.msk [vmem:[%s4601_s29 + $0x90] sm:$0xf] %vm2374_vm1, %v2890_v3  ;;  %v2619_v25 = vsel %vm1643_vm15, %v2542_v45, 0.0  ;;  %v2891_v47 = vpack.c.bf16 %v2201_v63, %v2201_v63  ;;  %v2490_v14 = vsel %vm1643_vm15, %v2201_v63, 0.0  ;;  %v2543_v2 = vmul.f32 %v2201_v63, %v2201_v63 }
 0x2a0   : > { %v2620_v41 = vadd.f32 %v2619_v25, %v2618_v34  ;;  %v2491_v18 = vadd.f32 %v2490_v14, %v2489_v5 }
 0x2a1   : > { %2412 = vst.msk [vmem:[%s4601_s29 + $0x94] sm:$0xf] %vm2374_vm1, %v2891_v47  ;;  %v2621_v13 = vsel %vm1643_vm15, %v2543_v2, 0.0 }
 0x2a2   : > { %v2622_v1 = vadd.f32 %v2621_v13, %v2620_v41 }
 0x2a6   : > { %v1939_v36 = vpop.f32.mrb[32].mxu1 }
 0x2a7   : > { %v2202_v38 = vmul.f32 %v2147_v24, %v1939_v36  ;;  %v3004_v7 = vpop.f32.mrb[33].mxu1 }
 0x2a8   : > { %v1942_v31 = vpop.f32.mrb[34].mxu1 }
 0x2a9   : > { %v2892_v51 = vpack.c.bf16 %v2202_v38, %v2202_v38  ;;  %v2492_v26 = vsel %vm1643_vm15, %v2202_v38, 0.0  ;;  %v2544_v10 = vmul.f32 %v2202_v38, %v2202_v38  ;;  %v2203_v46 = vmul.f32 %v2152_v62, %v1942_v31  ;;  %v3005_v58 = vpop.f32.mrb[35].mxu1 }
 0x2aa   : > { %v2493_v50 = vadd.f32 %v2492_v26, %v2491_v18 }
 0x2ab   : > { %2413 = vst.msk [vmem:[%s4601_s29 + $0x98] sm:$0xf] %vm2374_vm1, %v2892_v51  ;;  %v2623_v39 = vsel %vm1643_vm15, %v2544_v10, 0.0  ;;  %v2893_v54 = vpack.c.bf16 %v2203_v46, %v2203_v46  ;;  %v2494_v27 = vsel %vm1643_vm15, %v2203_v46, 0.0  ;;  %v2545_v37 = vmul.f32 %v2203_v46, %v2203_v46 }
 0x2ac   : > { %v2624_v42 = vadd.f32 %v2623_v39, %v2622_v1  ;;  %v2495_v53 = vadd.f32 %v2494_v27, %v2493_v50 }
 0x2ad   : > { %2414 = vst.msk [vmem:[%s4601_s29 + $0x9c] sm:$0xf] %vm2374_vm1, %v2893_v54  ;;  %v2625_v59 = vsel %vm1643_vm15, %v2545_v37, 0.0 }
 0x2ae   : > { %v2626_v20 = vadd.f32 %v2625_v59, %v2624_v42 }
 0x2b2   : > { %v1947_v29 = vpop.f32.mrb[36].mxu1 }
 0x2b3   : > { %v2204_v9 = vmul.f32 %v2157_v16, %v1947_v29  ;;  %v3008_v21 = vpop.f32.mrb[37].mxu1 }
 0x2b4   : > { %v1950_v19 = vpop.f32.mrb[38].mxu1 }
 0x2b5   : > { %v2894_v48 = vpack.c.bf16 %v2204_v9, %v2204_v9  ;;  %v2496_v8 = vsel %vm1643_vm15, %v2204_v9, 0.0  ;;  %v2546_v23 = vmul.f32 %v2204_v9, %v2204_v9  ;;  %v2205_v33 = vmul.f32 %v2162_v49, %v1950_v19  ;;  %v3009_v55 = vpop.f32.mrb[39].mxu1 }
 0x2b6   : > { %v2497_v15 = vadd.f32 %v2496_v8, %v2495_v53 }
 0x2b7   : > { %2415 = vst.msk [vmem:[%s4601_s29 + $0xa0] sm:$0xf] %vm2374_vm1, %v2894_v48  ;;  %v2627_v22 = vsel %vm1643_vm15, %v2546_v23, 0.0  ;;  %v2895_v32 = vpack.c.bf16 %v2205_v33, %v2205_v33  ;;  %v2498_v57 = vsel %vm1643_vm15, %v2205_v33, 0.0  ;;  %v2547_v60 = vmul.f32 %v2205_v33, %v2205_v33 }
 0x2b8   : > { %v2628_v44 = vadd.f32 %v2627_v22, %v2626_v20  ;;  %v2499_v28 = vadd.f32 %v2498_v57, %v2497_v15 }
 0x2b9   : > { %2416 = vst.msk [vmem:[%s4601_s29 + $0xa4] sm:$0xf] %vm2374_vm1, %v2895_v32  ;;  %v2629_v35 = vsel %vm1643_vm15, %v2547_v60, 0.0 }
 0x2ba   : > { %v2500_v56 = vrot.slane %v2499_v28, 4  ;;  %v2630_v43 = vadd.f32 %v2629_v35, %v2628_v44 }
 0x2bc   : > { %v2501_v52 = vadd.f32 %v2500_v56, %v2499_v28  ;;  %v2631_v4 = vrot.slane %v2630_v43, 4 }
 0x2be   : > { %v2502_v61 = vrot.slane %v2501_v52, 2  ;;  %v2632_v34 = vadd.f32 %v2631_v4, %v2630_v43 }
 0x2c0   : > { %v2503_v11 = vadd.f32 %v2502_v61, %v2501_v52  ;;  %v2633_v6 = vrot.slane %v2632_v34, 2 }
 0x2c2   : > { %v2504_v12 = vrot.slane %v2503_v11, 1  ;;  %v2634_v40 = vadd.f32 %v2633_v6, %v2632_v34 }
 0x2c4   : > { %v2635_v30 = vrot.slane %v2634_v40, 1  ;;  %v2505_v3 = vadd.f32 %v2504_v12, %v2503_v11 }
 0x2c6   : > { %v2636_v0 = vadd.f32 %v2635_v30, %v2634_v40 }
 0x2c8   : > { %v2638_v45 = vsel %vm2637_vm2, %v2505_v3, %v2636_v0 }
 0x2c9   : > { %2640 = vst.msk [vmem:[%s300_s7] sm:$0x3] %vm2639_vm3, %v2638_v45 }
 0x2ca PF: > { %s16_s18 = sadd.s32 1, %s3085_s18  }
 0x2cb   : > { %p13_p6 = scmp.ge.s32.totalorder %s16_s18, 4  }
 0x2cd   :  { %15 = sbr.rel (!%p13_p6) target bundleno = 1 (0x1), region = 84 }

</bundles_post_ra>
